<compile_context>
chip_gen: v7x
topology: tpu7x:2x2x1
jax: 0.10.0
libtpu: 0.0.40
codegen_flags: <defaults>
</compile_context>

<pallas_src>
import jax
import jax.numpy as jnp
from jax.experimental import pallas as pl
from jax.experimental.pallas import tpu as pltpu


def _discriminator_kernel(x_ref,
                          w1_ref, b1_ref,
                          w2_ref, b2_ref,
                          w3_ref, b3_ref,
                          w4_ref, b4_ref,
                          o_ref):
    # Cast activations to bf16 in-kernel (avoids a wrapper-side HBM cast pass).
    x = x_ref[...].astype(jnp.bfloat16)

    # Layer 1: Linear(input_dim, 1024) + ReLU   (bf16 operands, f32 accumulate)
    z = jnp.dot(x, w1_ref[...], preferred_element_type=jnp.float32) + b1_ref[...]
    h = jnp.maximum(z, 0.0).astype(jnp.bfloat16)

    # Layer 2: Linear(1024, 512) + ReLU
    z = jnp.dot(h, w2_ref[...], preferred_element_type=jnp.float32) + b2_ref[...]
    h = jnp.maximum(z, 0.0).astype(jnp.bfloat16)

    # Layer 3: Linear(512, 256) + ReLU  (keep f32 -- feeds the VPU final layer)
    z = jnp.dot(h, w3_ref[...], preferred_element_type=jnp.float32) + b3_ref[...]
    h = jnp.maximum(z, 0.0)

    # Layer 4: Linear(256, 1) + Sigmoid.  N=1 would waste the MXU; do a VPU
    # broadcast-multiply against the (1, 256) weight row + a lane reduction.
    z4 = jnp.sum(h * w4_ref[...], axis=-1, keepdims=True) + b4_ref[...]
    o_ref[...] = jax.nn.sigmoid(z4).astype(o_ref.dtype)


def _round_up(x, m):
    return ((x + m - 1) // m) * m


def prepare_params(params):
    """One-time weight preparation, hoisted out of the per-call wrapper.

    Casts the three large weight matrices to bf16 (half the resident-weight DMA,
    native fast MXU path) and pre-transposes w4 to a (1, 256) f32 row for the
    VPU final layer. Call once and reuse across forward calls."""
    return {
        "w1": params["w1"].astype(jnp.bfloat16),   # (input_dim, 1024)
        "w2": params["w2"].astype(jnp.bfloat16),   # (1024, 512)
        "w3": params["w3"].astype(jnp.bfloat16),   # (512, 256)
        "w4_row": params["w4"].T.astype(jnp.float32),  # (1, 256)
        "b1": params["b1"].astype(jnp.float32),    # (1, 1024)
        "b2": params["b2"].astype(jnp.float32),    # (1, 512)
        "b3": params["b3"].astype(jnp.float32),    # (1, 256)
        "b4": params["b4"].astype(jnp.float32),    # (1, 1)
    }


def discriminator_forward(x, prepared, *, tile_m=None):
    """Fused Discriminator forward.

    x: (B, input_dim) f32.
    prepared: output of `prepare_params` (bf16 weights, f32 biases, w4 as a row).
    """
    B, input_dim = x.shape
    w1, w2, w3 = prepared["w1"], prepared["w2"], prepared["w3"]
    w4 = prepared["w4_row"]
    b1, b2, b3, b4 = prepared["b1"], prepared["b2"], prepared["b3"], prepared["b4"]
    assert w1.shape[0] == input_dim

    d1, d2, d3 = w1.shape[1], w2.shape[1], w3.shape[1]
    out_dim = 1

    if tile_m is None:
        # >=2 grid steps so the "parallel" batch axis shards across both v7x
        # TensorCores; 16-aligned (bf16 sublane packing); capped at 512 (VMEM
        # headroom is ample: resident bf16 weights ~1.6 MB + a few MB activations).
        tile_m = max(16, min(_round_up(pl.cdiv(B, 2), 16), 512))

    B_pad = _round_up(B, tile_m)
    x_in = x if B_pad == B else jnp.pad(x, ((0, B_pad - B), (0, 0)))

    def resident_spec(shape):
        # Whole-array block with a constant index map: DMA'd once, then resident
        # in VMEM across all grid steps (no re-fetch).
        return pl.BlockSpec(shape, lambda i: (0,) * len(shape))

    grid = (B_pad // tile_m,)

    flops = 2 * B_pad * (input_dim * d1 + d1 * d2 + d2 * d3 + d3 * out_dim)
    bytes_accessed = (
        x_in.size * 4
        + (w1.size + w2.size + w3.size) * 2 + w4.size * 4
        + (b1.size + b2.size + b3.size + b4.size) * 4
        + B_pad * out_dim * 4
    )
    cost = pl.CostEstimate(flops=flops,
                           transcendentals=B_pad * out_dim,
                           bytes_accessed=bytes_accessed)

    out = pl.pallas_call(
        _discriminator_kernel,
        out_shape=jax.ShapeDtypeStruct((B_pad, out_dim), jnp.float32),
        grid_spec=pltpu.PrefetchScalarGridSpec(
            num_scalar_prefetch=0,
            grid=grid,
            in_specs=[
                pl.BlockSpec((tile_m, input_dim), lambda i: (i, 0)),
                resident_spec(w1.shape), resident_spec(b1.shape),
                resident_spec(w2.shape), resident_spec(b2.shape),
                resident_spec(w3.shape), resident_spec(b3.shape),
                resident_spec(w4.shape), resident_spec(b4.shape),
            ],
            out_specs=pl.BlockSpec((tile_m, out_dim), lambda i: (i, 0)),
        ),
        compiler_params=pltpu.CompilerParams(
            dimension_semantics=("parallel",),
        ),
        cost_estimate=cost,
    )(x_in, w1, b1, w2, b2, w3, b3, w4, b4)

    return out[:B]


def init_params(key, input_dim):
    """Deterministic init mimicking PyTorch Linear default (uniform +/- 1/sqrt(fan_in)).
    Weights stored transposed: (in, out). All f32; `prepare_params` makes bf16 copies."""
    dims = [(input_dim, 1024), (1024, 512), (512, 256), (256, 1)]
    params = {}
    for idx, (fan_in, fan_out) in enumerate(dims, start=1):
        key, kw, kb = jax.random.split(key, 3)
        bound = 1.0 / jnp.sqrt(fan_in)
        params[f"w{idx}"] = jax.random.uniform(
            kw, (fan_in, fan_out), jnp.float32, -bound, bound)
        params[f"b{idx}"] = jax.random.uniform(
            kb, (1, fan_out), jnp.float32, -bound, bound)
    return params


def reference_forward(x, params):
    h = jnp.maximum(x @ params["w1"] + params["b1"], 0.0)
    h = jnp.maximum(h @ params["w2"] + params["b2"], 0.0)
    h = jnp.maximum(h @ params["w3"] + params["b3"], 0.0)
    return jax.nn.sigmoid(h @ params["w4"] + params["b4"])


if __name__ == "__main__":
    input_dim = 64     # small test shape; block last dim == full dim, so no padding
    batch = 32         # default tile_m -> 16, grid of 2 steps (both v7x TCs busy)

    key = jax.random.PRNGKey(0)
    key, kx = jax.random.split(key)
    x = jax.random.normal(kx, (batch, input_dim), jnp.float32)
    params = init_params(key, input_dim)
    prepared = prepare_params(params)          # one-time weight prep (hoisted)

    out = discriminator_forward(x, prepared)
    out = jax.block_until_ready(out)

    ref = reference_forward(x, params)
    assert out.shape == (batch, 1)
    # bf16 matmul operands with f32 accumulation -> small deviation vs f32 reference.
    assert jnp.allclose(out, ref, atol=2e-2, rtol=2e-2), "mismatch vs reference"

    print("KERNEL_OK")
</pallas_src>

<mosaic_0001>
module attributes {stable_mosaic.version = 11 : i64} {
  func.func @_discriminator_kernel(%arg0: i32, %arg1: memref<16x64xf32, #tpu.memory_space<vmem>>, %arg2: memref<64x1024xbf16, #tpu.memory_space<vmem>>, %arg3: memref<1x1024xf32, #tpu.memory_space<vmem>>, %arg4: memref<1024x512xbf16, #tpu.memory_space<vmem>>, %arg5: memref<1x512xf32, #tpu.memory_space<vmem>>, %arg6: memref<512x256xbf16, #tpu.memory_space<vmem>>, %arg7: memref<1x256xf32, #tpu.memory_space<vmem>>, %arg8: memref<1x256xf32, #tpu.memory_space<vmem>>, %arg9: memref<1x1xf32, #tpu.memory_space<vmem>>, %arg10: memref<16x1xf32, #tpu.memory_space<vmem>>) attributes {dimension_semantics = [#tpu.dimension_semantics<parallel>], iteration_bounds = array<i64: 2>, scalar_prefetch = 0 : i64, scratch_operands = 0 : i64, tpu.core_type = #tpu.core_type<tc>, window_params = [{transform_indices = @transform_0, window_bounds = array<i64: 16, 64>}, {pipeline_mode = #tpu.pipeline_mode<synchronous>, transform_indices = @transform_1, window_bounds = array<i64: 64, 1024>}, {pipeline_mode = #tpu.pipeline_mode<synchronous>, transform_indices = @transform_2, window_bounds = array<i64: 1, 1024>}, {pipeline_mode = #tpu.pipeline_mode<synchronous>, transform_indices = @transform_3, window_bounds = array<i64: 1024, 512>}, {pipeline_mode = #tpu.pipeline_mode<synchronous>, transform_indices = @transform_4, window_bounds = array<i64: 1, 512>}, {pipeline_mode = #tpu.pipeline_mode<synchronous>, transform_indices = @transform_5, window_bounds = array<i64: 512, 256>}, {pipeline_mode = #tpu.pipeline_mode<synchronous>, transform_indices = @transform_6, window_bounds = array<i64: 1, 256>}, {pipeline_mode = #tpu.pipeline_mode<synchronous>, transform_indices = @transform_7, window_bounds = array<i64: 1, 256>}, {pipeline_mode = #tpu.pipeline_mode<synchronous>, transform_indices = @transform_8, window_bounds = array<i64: 1, 1>}, {transform_indices = @transform_9, window_bounds = array<i64: 16, 1>}]} {
    %c0 = arith.constant 0 : index
    %c0_0 = arith.constant 0 : index
    %0 = vector.load %arg1[%c0, %c0_0] : memref<16x64xf32, #tpu.memory_space<vmem>>, vector<16x64xf32>
    %1 = arith.truncf %0 : vector<16x64xf32> to vector<16x64xbf16>
    %c0_1 = arith.constant 0 : index
    %c0_2 = arith.constant 0 : index
    %2 = vector.load %arg2[%c0_1, %c0_2] : memref<64x1024xbf16, #tpu.memory_space<vmem>>, vector<64x1024xbf16>
    %cst = arith.constant dense<0.000000e+00> : vector<16x1024xf32>
    %3 = tpu.matmul %1, %2, %cst {dimension_numbers = #tpu.dot_dimension_numbers<[1], [0], [0], [1], [0, 0, 1, 1], [], []>} : vector<16x64xbf16>, vector<64x1024xbf16>, vector<16x1024xf32> -> vector<16x1024xf32>
    %c0_3 = arith.constant 0 : index
    %c0_4 = arith.constant 0 : index
    %4 = vector.load %arg3[%c0_3, %c0_4] : memref<1x1024xf32, #tpu.memory_space<vmem>>, vector<1x1024xf32>
    %5 = vector.broadcast %4 : vector<1x1024xf32> to vector<16x1024xf32>
    %6 = arith.addf %3, %5 : vector<16x1024xf32>
    %cst_5 = arith.constant 0.000000e+00 : f32
    %7 = vector.broadcast %cst_5 : f32 to vector<16x1024xf32>
    %8 = arith.maximumf %6, %7 : vector<16x1024xf32>
    %9 = arith.truncf %8 : vector<16x1024xf32> to vector<16x1024xbf16>
    %c0_6 = arith.constant 0 : index
    %c0_7 = arith.constant 0 : index
    %10 = vector.load %arg4[%c0_6, %c0_7] : memref<1024x512xbf16, #tpu.memory_space<vmem>>, vector<1024x512xbf16>
    %cst_8 = arith.constant dense<0.000000e+00> : vector<16x512xf32>
    %11 = tpu.matmul %9, %10, %cst_8 {dimension_numbers = #tpu.dot_dimension_numbers<[1], [0], [0], [1], [0, 0, 1, 1], [], []>} : vector<16x1024xbf16>, vector<1024x512xbf16>, vector<16x512xf32> -> vector<16x512xf32>
    %c0_9 = arith.constant 0 : index
    %c0_10 = arith.constant 0 : index
    %12 = vector.load %arg5[%c0_9, %c0_10] : memref<1x512xf32, #tpu.memory_space<vmem>>, vector<1x512xf32>
    %13 = vector.broadcast %12 : vector<1x512xf32> to vector<16x512xf32>
    %14 = arith.addf %11, %13 : vector<16x512xf32>
    %cst_11 = arith.constant 0.000000e+00 : f32
    %15 = vector.broadcast %cst_11 : f32 to vector<16x512xf32>
    %16 = arith.maximumf %14, %15 : vector<16x512xf32>
    %17 = arith.truncf %16 : vector<16x512xf32> to vector<16x512xbf16>
    %c0_12 = arith.constant 0 : index
    %c0_13 = arith.constant 0 : index
    %18 = vector.load %arg6[%c0_12, %c0_13] : memref<512x256xbf16, #tpu.memory_space<vmem>>, vector<512x256xbf16>
    %cst_14 = arith.constant dense<0.000000e+00> : vector<16x256xf32>
    %19 = tpu.matmul %17, %18, %cst_14 {dimension_numbers = #tpu.dot_dimension_numbers<[1], [0], [0], [1], [0, 0, 1, 1], [], []>} : vector<16x512xbf16>, vector<512x256xbf16>, vector<16x256xf32> -> vector<16x256xf32>
    %c0_15 = arith.constant 0 : index
    %c0_16 = arith.constant 0 : index
    %20 = vector.load %arg7[%c0_15, %c0_16] : memref<1x256xf32, #tpu.memory_space<vmem>>, vector<1x256xf32>
    %21 = vector.broadcast %20 : vector<1x256xf32> to vector<16x256xf32>
    %22 = arith.addf %19, %21 : vector<16x256xf32>
    %cst_17 = arith.constant 0.000000e+00 : f32
    %23 = vector.broadcast %cst_17 : f32 to vector<16x256xf32>
    %24 = arith.maximumf %22, %23 : vector<16x256xf32>
    %c0_18 = arith.constant 0 : index
    %c0_19 = arith.constant 0 : index
    %25 = vector.load %arg8[%c0_18, %c0_19] : memref<1x256xf32, #tpu.memory_space<vmem>>, vector<1x256xf32>
    %26 = vector.broadcast %25 : vector<1x256xf32> to vector<16x256xf32>
    %27 = arith.mulf %24, %26 : vector<16x256xf32>
    %cst_20 = arith.constant dense<0.000000e+00> : vector<16xf32>
    %28 = vector.multi_reduction <add>, %27, %cst_20 [1] : vector<16x256xf32> to vector<16xf32>
    %29 = vector.shape_cast %28 : vector<16xf32> to vector<16x1xf32>
    %c0_21 = arith.constant 0 : index
    %c0_22 = arith.constant 0 : index
    %30 = vector.load %arg9[%c0_21, %c0_22] : memref<1x1xf32, #tpu.memory_space<vmem>>, vector<1x1xf32>
    %31 = vector.broadcast %30 : vector<1x1xf32> to vector<16x1xf32>
    %32 = arith.addf %29, %31 : vector<16x1xf32>
    %33 = arith.negf %32 : vector<16x1xf32>
    %34 = math.exp %33 : vector<16x1xf32>
    %cst_23 = arith.constant 1.000000e+00 : f32
    %35 = vector.broadcast %cst_23 : f32 to vector<16x1xf32>
    %36 = arith.addf %35, %34 : vector<16x1xf32>
    %37 = arith.divf %35, %36 : vector<16x1xf32>
    %c0_24 = arith.constant 0 : index
    %c0_25 = arith.constant 0 : index
    %38 = vector.load %arg10[%c0_24, %c0_25] : memref<16x1xf32, #tpu.memory_space<vmem>>, vector<16x1xf32>
    tpu.vector_store %arg10[%c0_24, %c0_25], %37 {strides = array<i32>} : memref<16x1xf32, #tpu.memory_space<vmem>>, vector<16x1xf32>,
    return
  }
  func.func @transform_0(%arg0: i32) -> (i32, i32) {
    %c0_i32 = arith.constant 0 : i32
    %c0_i32_0 = arith.constant 0 : i32
    return %arg0, %c0_i32 : i32, i32
  }
  func.func @transform_1(%arg0: i32) -> (i32, i32) {
    %c0_i32 = arith.constant 0 : i32
    %c0_i32_0 = arith.constant 0 : i32
    %c0_i32_1 = arith.constant 0 : i32
    return %c0_i32, %c0_i32_0 : i32, i32
  }
  func.func @transform_2(%arg0: i32) -> (i32, i32) {
    %c0_i32 = arith.constant 0 : i32
    %c0_i32_0 = arith.constant 0 : i32
    %c0_i32_1 = arith.constant 0 : i32
    return %c0_i32, %c0_i32_0 : i32, i32
  }
  func.func @transform_3(%arg0: i32) -> (i32, i32) {
    %c0_i32 = arith.constant 0 : i32
    %c0_i32_0 = arith.constant 0 : i32
    %c0_i32_1 = arith.constant 0 : i32
    return %c0_i32, %c0_i32_0 : i32, i32
  }
  func.func @transform_4(%arg0: i32) -> (i32, i32) {
    %c0_i32 = arith.constant 0 : i32
    %c0_i32_0 = arith.constant 0 : i32
    %c0_i32_1 = arith.constant 0 : i32
    return %c0_i32, %c0_i32_0 : i32, i32
  }
  func.func @transform_5(%arg0: i32) -> (i32, i32) {
    %c0_i32 = arith.constant 0 : i32
    %c0_i32_0 = arith.constant 0 : i32
    %c0_i32_1 = arith.constant 0 : i32
    return %c0_i32, %c0_i32_0 : i32, i32
  }
  func.func @transform_6(%arg0: i32) -> (i32, i32) {
    %c0_i32 = arith.constant 0 : i32
    %c0_i32_0 = arith.constant 0 : i32
    %c0_i32_1 = arith.constant 0 : i32
    return %c0_i32, %c0_i32_0 : i32, i32
  }
  func.func @transform_7(%arg0: i32) -> (i32, i32) {
    %c0_i32 = arith.constant 0 : i32
    %c0_i32_0 = arith.constant 0 : i32
    %c0_i32_1 = arith.constant 0 : i32
    return %c0_i32, %c0_i32_0 : i32, i32
  }
  func.func @transform_8(%arg0: i32) -> (i32, i32) {
    %c0_i32 = arith.constant 0 : i32
    %c0_i32_0 = arith.constant 0 : i32
    %c0_i32_1 = arith.constant 0 : i32
    return %c0_i32, %c0_i32_0 : i32, i32
  }
  func.func @transform_9(%arg0: i32) -> (i32, i32) {
    %c0_i32 = arith.constant 0 : i32
    %c0_i32_0 = arith.constant 0 : i32
    return %arg0, %c0_i32 : i32, i32
  }
}

</mosaic_0001>

<bundles_post_ra>
// kernel: tpu_custom_call.1
= control target key start
LH: loop header
LB: loop body
LE: loop exit
PB: predicated region body
PF: predicated region fallthrough
CT: control target
= control target key end

     0   :  { %s4894_s0 = inlined_call_operand.hbm [shape: f32[32,64], index: 0, kind: input, shape index: {}]   ;;  %s4895_s1 = inlined_call_operand.hbm [shape: bf16[64,1024], index: 1, kind: input, shape index: {}]   ;;  %s4896_s2 = inlined_call_operand.vmem [shape: f32[1,1024], index: 2, kind: input, shape index: {}]   ;;  %s4897_s3 = inlined_call_operand.hbm [shape: bf16[1024,512], index: 3, kind: input, shape index: {}]   ;;  %s4898_s4 = inlined_call_operand.vmem [shape: f32[1,512], index: 4, kind: input, shape index: {}]   ;;  %s4899_s5 = inlined_call_operand.hbm [shape: bf16[512,256], index: 5, kind: input, shape index: {}]   ;;  %s4900_s6 = inlined_call_operand.vmem [shape: f32[1,256], index: 6, kind: input, shape index: {}]   ;;  %s4901_s7 = inlined_call_operand.vmem [shape: f32[1,256], index: 7, kind: input, shape index: {}]   ;;  %s4902_s8 = inlined_call_operand.<no memory space> [shape: f32[1,1], index: 8, kind: input, shape index: {}]   ;;  %s4903_s9 = inlined_call_operand.vmem [shape: f32[32,1], index: 9, kind: output, shape index: {}]  }
   0x1   :  { %v14_v0 = vstv %s4902_s8 }
   0x2   :  { %15 = vst [vmem:[#allocation2] sm:$0x1] %v14_v0 }
   0x3   :  { %16 = vsyncpa [#allocation4], 0 }
   0x4   :  { %18 = vsyncpa [#allocation4 + $0x1], 0 }
   0x5   :  { %19 = vsyncpa [#allocation6], 0 }
   0x6   :  { %20 = vsyncpa [#allocation9], 0  ;;  %s4587_s11 = smov 0   ;;  %s4589_s12 = smov 0  }
   0x7   :  { %s4591_s13 = smov 0   ;;  %s4593_s14 = smov 0  }
   0x8 LB: > { %s4908_s8 = sadd.s32 4294967295, %s4521_s14   ;;  %p46_p0 = scmp.ne.s32.totalorder %s4513_s12, %s4509_s11  ;;  %s4521_s14 = sphi %s4593_s14, %s4922_s14   ;;  %s4517_s13 = sphi %s4591_s13, %s4921_s13   ;;  %s4513_s12 = sphi %s4589_s12, %s4920_s12   ;;  %s4509_s11 = sphi %s4587_s11, %s4919_s11  }
   0x9   : > { %p4609_p1 = scmp.eq.s32.totalorder %s4908_s8, 0  ;;  %p3383_p2 = scmp.ge.s32.totalorder %s4521_s14, 1 }
   0xa   : > { %p251_p3 = scmp.lt.s32.totalorder %s4521_s14, 3  ;;  %s4523_s18 = smov [#allocation5]  }
   0xb   : > { %s4909_s15 = scalar_select %p4609_p1, 1, 0 }
   0xc   : > { %p4617_p4 = por %p4609_p1, %p46_p0  ;;  %p4621_p5 = pnand %p3383_p2, %p251_p3 }
   0xd   : > { %s263_s19 = sshll.u32 %s4523_s18, 4  ;;  %s4524_s21 = smov [#allocation7]   ;;  %s264_s19 = int_to_ptr.vmem [resolvable:$true] %s263_s19 }
   0xe   : > { %s4910_s16 = scalar_select %p4617_p4, 1, 0 }
   0xf   : > { %s4911_s17 = scalar_select %p4621_p5, 1, 0 }
  0x10   : > { %p3814_p6 = pneg %p4621_p5  ;;  %s279_s22 = sshll.u32 %s4524_s21, 4  ;;  %s4633_s22 = int_to_ptr.vmem [resolvable:$true] %s279_s22 }
  0x11   : > { %s4365_s25 = scalar_lea.hbm %s4895_s1, 4096 }
  0x12   : > { %p4629_p7 = pnand %p3814_p6, %p4609_p1  ;;  %p4366_p8 = scmp.ne.s32.totalorder %s4895_s1, %s4365_s25 }
  0x13   : > { %p4372_p12 = scmp.lt.u32.totalorder %s4365_s25, %s4895_s1 }
  0x14   : > { %p4643_p9 = pneg %p4629_p7 }
  0x16   : > { %p4368_p10 = pnand %p4643_p9, %p4366_p8 }
  0x18   : > { %p4369_p11 = pneg %p4368_p10 }
  0x1a   : > { %p4374_p13 = pnand %p4372_p12, %p4369_p11 }
  0x1c   : > { %4377 = shalt.err (!%p4374_p13)
}
  0x1d   : > { %s4378_s10 = scalar_lea.vmem %s264_s19, 4096  ;;  %p4386_p6 = scmp.lt.s32.totalorder %s264_s19, %s264_s19 }
  0x1e   : > { %p4379_p0 = scmp.ne.s32.totalorder %s264_s19, %s4378_s10  ;;  %p4387_p1 = scmp.lt.s32.totalorder %s4378_s10, %s4378_s10 }
  0x20   : > { %p4381_p2 = pnand %p4379_p0, %p4643_p9  ;;  %p4388_p4 = por %p4387_p1, %p4386_p6 }
  0x22   : > { %p4382_p3 = pneg %p4381_p2 }
  0x24   : > { %p4389_p5 = pnand %p4388_p4, %p4382_p3 }
  0x26   : > { %4392 = shalt.err (!%p4389_p5)
}
  0x27   : > { %s4525_s11 = smov 512   ;;  %s4526_s18 = smov 32  }
  0x28   : > { %3817 = dma.hbm_to_vmem [thread:$0]  (!%p4629_p7), %s4895_s1, 4096, %s264_s19, [#allocation6], %s4525_s11, %s4525_s11, %s4526_s18  }
  0x29   : > { %s4393_s26 = scalar_lea.hbm %s4897_s3, 32768 }
  0x2a   : > { %p4394_p8 = scmp.ne.s32.totalorder %s4897_s3, %s4393_s26  ;;  %p4400_p5 = scmp.lt.u32.totalorder %s4393_s26, %s4897_s3 }
  0x2c   : > { %p4396_p1 = pnand %p4394_p8, %p4643_p9 }
  0x2e   : > { %p4397_p4 = pneg %p4396_p1 }
  0x30   : > { %p4402_p10 = pnand %p4400_p5, %p4397_p4 }
  0x32   : > { %4405 = shalt.err (!%p4402_p10)
}
  0x33   : > { %s4406_s19 = scalar_lea.vmem %s4633_s22, 32768  ;;  %p4414_p0 = scmp.lt.s32.totalorder %s4633_s22, %s4633_s22 }
  0x34   : > { %p4407_p11 = scmp.ne.s32.totalorder %s4633_s22, %s4406_s19  ;;  %p4415_p2 = scmp.lt.s32.totalorder %s4406_s19, %s4406_s19 }
  0x36   : > { %p4409_p12 = pnand %p4407_p11, %p4643_p9  ;;  %p4416_p3 = por %p4415_p2, %p4414_p0 }
  0x38   : > { %p4410_p13 = pneg %p4409_p12 }
  0x3a   : > { %p4417_p6 = pnand %p4416_p3, %p4410_p13 }
  0x3c   : > { %4420 = shalt.err (!%p4417_p6)
}
  0x3d   : > { %s4527_s11 = smov 256   ;;  %s4528_s18 = smov 16  }
  0x3e   : > { %3820 = dma.hbm_to_vmem [thread:$0]  (!%p4629_p7), %s4897_s3, 32768, %s4633_s22, [#allocation6], %s4527_s11, %s4527_s11, %s4528_s18  }
  0x3f   : > { %s4529_s24 = smov [#allocation8]   ;;  %s4421_s29 = scalar_lea.hbm %s4899_s5, 8192 }
  0x40   : > { %s295_s25 = sshll.u32 %s4529_s24, 4  ;;  %p4422_p8 = scmp.ne.s32.totalorder %s4899_s5, %s4421_s29  ;;  %s296_s25 = int_to_ptr.vmem [resolvable:$true] %s295_s25 }
  0x41   : > { %p4428_p5 = scmp.lt.u32.totalorder %s4421_s29, %s4899_s5 }
  0x42   : > { %p4424_p1 = pnand %p4422_p8, %p4643_p9 }
  0x44   : > { %p4425_p4 = pneg %p4424_p1 }
  0x46   : > { %p4430_p10 = pnand %p4428_p5, %p4425_p4 }
  0x48   : > { %4433 = shalt.err (!%p4430_p10)
}
  0x49   : > { %s4434_s22 = scalar_lea.vmem %s296_s25, 8192  ;;  %p4442_p0 = scmp.lt.s32.totalorder %s296_s25, %s296_s25 }
  0x4a   : > { %p4435_p11 = scmp.ne.s32.totalorder %s296_s25, %s4434_s22  ;;  %p4443_p2 = scmp.lt.s32.totalorder %s4434_s22, %s4434_s22 }
  0x4c   : > { %p4437_p12 = pnand %p4435_p11, %p4643_p9  ;;  %p4444_p3 = por %p4443_p2, %p4442_p0 }
  0x4e   : > { %p4438_p13 = pneg %p4437_p12 }
  0x50   : > { %p4445_p6 = pnand %p4444_p3, %p4438_p13 }
  0x52   : > { %4448 = shalt.err (!%p4445_p6)
}
  0x53   : > { %s4530_s11 = smov 128   ;;  %s4531_s8 = smov 8  }
  0x54   : > { %3823 = dma.hbm_to_vmem [thread:$0]  (!%p4629_p7), %s4899_s5, 8192, %s296_s25, [#allocation9], %s4530_s11, %s4530_s11, %s4531_s8  }
  0x55   : > { %s4704_s21 = sadd.s32 1, %s4521_s14   ;;  %s33_s24 = sadd.s32 1, %s4517_s13 }
  0x56   : > { %s30_s23 = ssub.s32 %s4521_s14, %s4704_s21  ;;  %p40_p8 = scmp.ne.s32.totalorder %s4517_s13, %s4513_s12 }
  0x57   : > { %p31_p9 = scmp.eq.s32.totalorder %s30_s23, 0  ;;  %p41_p1 = scmp.eq.s32.totalorder %s4521_s14, 0 }
  0x58   : > { %p3831_p4 = scmp.lt.s32.totalorder %s4521_s14, 2  ;;  %s318_s20 = sand.u32 1, %s4517_s13  }
  0x59   : > { %s4714_s26 = scalar_select %p31_p9, %s4517_s13, %s33_s24  }
  0x5a   : > { %p42_p5 = por %p41_p1, %p40_p8  ;;  %s3388_s27 = sshll.u32 %s318_s20, 4 }
  0x5b   : > { %s3759_s29 = sshll.u32 %s4521_s14, 8  ;;  %s322_s25 = scalar_lea.vmem [#allocation3], %s3388_s27 }
  0x5c   : > { %s4721_s19 = scalar_lea.hbm %s4894_s0, %s3759_s29  ;;  %s329_s22 = sshll.u32 %s322_s25, 4  ;;  %s4723_s22 = int_to_ptr.vmem [resolvable:$true] %s329_s22 }
  0x5d   : > { %p4725_p7 = pnand %p3831_p4, %p42_p5  ;;  %s4729_s18 = scalar_lea.sflag [#allocation4], %s318_s20 }
  0x5e   : > { %s4449_s23 = scalar_lea.hbm %s4721_s19, 256  ;;  %s4454_s29 = scalar_lea.hbm %s4894_s0, 512 }
  0x5f   : > { %p4450_p10 = scmp.ne.s32.totalorder %s4721_s19, %s4449_s23  ;;  %p4451_p11 = pneg %p4725_p7 }
  0x60   : > { %p4455_p0 = scmp.lt.u32.totalorder %s4721_s19, %s4894_s0  ;;  %p4456_p2 = scmp.lt.u32.totalorder %s4454_s29, %s4449_s23 }
  0x61   : > { %p4452_p12 = pnand %p4451_p11, %p4450_p10  ;;  %p4458_p6 = scmp.lt.u32.totalorder %s4449_s23, %s4721_s19 }
  0x62   : > { %p4457_p3 = por %p4456_p2, %p4455_p0 }
  0x63   : > { %p4453_p13 = pneg %p4452_p12 }
  0x64   : > { %p4459_p9 = por %p4458_p6, %p4457_p3 }
  0x66   : > { %p4460_p8 = pnand %p4459_p9, %p4453_p13 }
  0x68   : > { %4463 = shalt.err (!%p4460_p8)
}
  0x69   : > { %s4464_s20 = scalar_lea.vmem %s4723_s22, 256  ;;  %s4532_s25 = smov [#allocation3]  }
  0x6a   : > { %p4465_p1 = scmp.ne.s32.totalorder %s4723_s22, %s4464_s20  ;;  %s4469_s24 = sshll.u32 %s4532_s25, 4  ;;  %s4470_s24 = int_to_ptr.vmem [resolvable:$false] %s4469_s24 }
  0x6b   : > { %s4471_s27 = scalar_lea.vmem %s4470_s24, 512  ;;  %p4472_p10 = scmp.lt.s32.totalorder %s4723_s22, %s4470_s24 }
  0x6c   : > { %p4467_p4 = pnand %p4465_p1, %p4451_p11  ;;  %p4473_p12 = scmp.lt.s32.totalorder %s4471_s27, %s4464_s20 }
  0x6e   : > { %p4468_p5 = pneg %p4467_p4  ;;  %p4474_p0 = por %p4473_p12, %p4472_p10 }
  0x70   : > { %p4475_p2 = pnand %p4474_p0, %p4468_p5 }
  0x72   : > { %4478 = shalt.err (!%p4475_p2)
}
  0x73   : > { %3827 = dma.hbm_to_vmem [thread:$0]  (!%p4725_p7), %s4721_s19, 256, %s4723_s22, %s4729_s18, %s4530_s11, %s4530_s11, %s4531_s8  }
  0x74   : > { %p4915_p11 = scmp.ne.s32.totalorder %s4911_s17, 0 }
  0x75   : > { %s343_s23 = sand.u32 (!%p4915_p11), 1, %s4513_s12   ;;  %p4916_p13 = scmp.ne.s32.totalorder (!%p4915_p11), %s4910_s16, 0 }
  0x76   : > { %341 = sbr.rel (%p4915_p11) target bundleno = 1247 (0x4df), region = 56  ;;  %s4763_s29 = sshll.u32 (!%p4915_p11), %s343_s23, 4 }
  0x77   : > { %s344_s30 = scalar_lea.sflag (!%p4915_p11), [#allocation4], %s343_s23  ;;  %s347_s10 = scalar_lea.vmem (!%p4915_p11), [#allocation3], %s4763_s29 }
  0x7d   : > { %4496 = dma.done.wait (%p4916_p13), %s344_s30, 256  }
  0x7e   : > { %4498 = vsyncadd (%p4916_p13), %s344_s30, 4294967040  ;;  %p4917_p3 = scmp.ne.s32.totalorder %s4909_s15, 0 }
  0x80   : > { %4500 = dma.done.wait (%p4917_p3), [#allocation6], 36864  }
  0x81   : > { %4502 = vsyncadd (%p4917_p3), [#allocation6], 4294930432 }
  0x82   : > { %4504 = dma.done.wait (%p4917_p3), [#allocation9], 8192  }
  0x83   : > { %4506 = vsyncadd (%p4917_p3), [#allocation9], 4294959104  ;;  %v4533_v1 = vmov 0   ;;  %v405_v2 = vld [vmem:[#allocation5] sm:$0xff]  ;;  %v406_v4 = vld [vmem:[#allocation5 + $0x8] sm:$0xff]  ;;  %vm639_vm0 = vcmask 523264  }
  0x84   : > { %675 = vmatprep.mubr.bf16.mxu0 %v4533_v1  ;;  %718 = vmatprep.mubr.bf16.mxu1 %v4533_v1  ;;  %v409_v3 = vld [vmem:[#allocation5 + $0x20] sm:$0xff]  ;;  %v410_v6 = vld [vmem:[#allocation5 + $0x28] sm:$0xff]  ;;  %v407_v32 = vld [vmem:[#allocation5 + $0x10] sm:$0xff]  ;;  %s4918_s18 = sadd.s32 4294967295, %s4521_s14   ;;  %vm3282_vm1 = vcmask 7168  }
  0x85   : > { %v3399_v5 = vcombine.high %v405_v2, %v409_v3  ;;  %v3398_v7 = vcombine.low %v405_v2, %v409_v3  ;;  %v413_v8 = vld [vmem:[#allocation5 + $0x40] sm:$0xff]  ;;  %v3401_v10 = vcombine.high %v406_v4, %v410_v6  ;;  %v3400_v11 = vcombine.low %v406_v4, %v410_v6  ;;  %v414_v13 = vld [vmem:[#allocation5 + $0x48] sm:$0xff]  ;;  %v411_v33 = vld [vmem:[#allocation5 + $0x30] sm:$0xff]  ;;  %s3396_s20 = sshll.u32 %s4918_s18, 1 }
  0x86   : > { %v417_v9 = vld [vmem:[#allocation5 + $0x60] sm:$0xff]  ;;  %v418_v14 = vld [vmem:[#allocation5 + $0x68] sm:$0xff]  ;;  %v408_v34 = vld [vmem:[#allocation5 + $0x18] sm:$0xff]  ;;  %v3403_v40 = vcombine.high %v407_v32, %v411_v33  ;;  %v3402_v45 = vcombine.low %v407_v32, %v411_v33  ;;  %p396_p7 = scmp.lt.s32.totalorder %s3396_s20, 3 }
  0x87   : > { %v3407_v12 = vcombine.high %v413_v8, %v417_v9  ;;  %v421_v15 = vld [vmem:[#allocation5 + $0x80] sm:$0xff]  ;;  %643 = vmatprep.subr.bf16.mxu0 %v3399_v5  ;;  %v3409_v16 = vcombine.high %v414_v13, %v418_v14  ;;  %v422_v18 = vld [vmem:[#allocation5 + $0x88] sm:$0xff]  ;;  %686 = vmatprep.subr.bf16.mxu1 %v3401_v10  ;;  %v3406_v20 = vcombine.low %v413_v8, %v417_v9  ;;  %v412_v35 = vld [vmem:[#allocation5 + $0x38] sm:$0xff] }
  0x88   : > { %v425_v17 = vld [vmem:[#allocation5 + $0xa0] sm:$0xff]  ;;  %v426_v19 = vld [vmem:[#allocation5 + $0xa8] sm:$0xff]  ;;  %644 = vmatpush1.bf16.msra.mxu0 %v3398_v7  ;;  %687 = vmatpush1.bf16.msra.mxu1 %v3400_v11  ;;  %v3408_v21 = vcombine.low %v414_v13, %v418_v14  ;;  %v415_v41 = vld [vmem:[#allocation5 + $0x50] sm:$0xff]  ;;  %v3405_v43 = vcombine.high %v408_v34, %v412_v35  ;;  %v3404_v51 = vcombine.low %v408_v34, %v412_v35  ;;  %s4924_s20 = smov (!%p396_p7, %s3396_s20), 3 }
  0x89   : > { %645 = vmatprep.subr.bf16.mxu0 %v3407_v12  ;;  %v3415_v22 = vcombine.high %v421_v15, %v425_v17  ;;  %688 = vmatprep.subr.bf16.mxu1 %v3409_v16  ;;  %v3417_v23 = vcombine.high %v422_v18, %v426_v19  ;;  %v429_v24 = vld [vmem:[#allocation5 + $0xc0] sm:$0xff]  ;;  %v430_v26 = vld [vmem:[#allocation5 + $0xc8] sm:$0xff]  ;;  %v3414_v28 = vcombine.low %v421_v15, %v425_v17  ;;  %v419_v42 = vld [vmem:[#allocation5 + $0x70] sm:$0xff]  ;;  %s3397_s25 = sshll.u32 %s4924_s20, 3 }
  0x8a   : > { %v433_v25 = vld [vmem:[#allocation5 + $0xe0] sm:$0xff]  ;;  %v434_v27 = vld [vmem:[#allocation5 + $0xe8] sm:$0xff]  ;;  %v3416_v29 = vcombine.low %v422_v18, %v426_v19  ;;  %v416_v46 = vld [vmem:[#allocation5 + $0x58] sm:$0xff]  ;;  %v3411_v48 = vcombine.high %v415_v41, %v419_v42  ;;  %v3410_v53 = vcombine.low %v415_v41, %v419_v42  ;;  %s399_s23 = scalar_lea.vmem %s4903_s9, %s3397_s25 }
  0x8b   : > { %v3423_v30 = vcombine.high %v429_v24, %v433_v25  ;;  %v3425_v31 = vcombine.high %v430_v26, %v434_v27  ;;  %v3422_v36 = vcombine.low %v429_v24, %v433_v25  ;;  %v402_v37 = vld [vmem:[%s347_s10] sm:$0xff]  ;;  %v403_v38 = vld [vmem:[%s347_s10 + $0x8] sm:$0xff]  ;;  %v3424_v39 = vcombine.low %v430_v26, %v434_v27 }
  0x8c   : > { %646 = vmatpush1.bf16.msra.mxu0 %v3406_v20  ;;  %689 = vmatpush1.bf16.msra.mxu1 %v3408_v21  ;;  %v404_v44 = vpack.c.bf16 %v403_v38, %v402_v37  ;;  %v420_v47 = vld [vmem:[#allocation5 + $0x78] sm:$0xff]  ;;  %v423_v49 = vld [vmem:[#allocation5 + $0x90] sm:$0xff] }
  0x8d   : > { %647 = vmatprep.subr.bf16.mxu0 %v3415_v22  ;;  %690 = vmatprep.subr.bf16.mxu1 %v3417_v23  ;;  %v427_v50 = vld [vmem:[#allocation5 + $0xb0] sm:$0xff]  ;;  %v3413_v52 = vcombine.high %v416_v46, %v420_v47  ;;  %v424_v54 = vld [vmem:[#allocation5 + $0x98] sm:$0xff]  ;;  %v3412_v59 = vcombine.low %v416_v46, %v420_v47 }
  0x8e   : > { %v428_v55 = vld [vmem:[#allocation5 + $0xb8] sm:$0xff]  ;;  %v3419_v56 = vcombine.high %v423_v49, %v427_v50  ;;  %v431_v57 = vld [vmem:[#allocation5 + $0xd0] sm:$0xff]  ;;  %v3418_v61 = vcombine.low %v423_v49, %v427_v50 }
  0x8f   : > { %v435_v58 = vld [vmem:[#allocation5 + $0xf0] sm:$0xff]  ;;  %v3421_v60 = vcombine.high %v424_v54, %v428_v55  ;;  %v432_v62 = vld [vmem:[#allocation5 + $0xd8] sm:$0xff]  ;;  %v3420_v2 = vcombine.low %v424_v54, %v428_v55 }
  0x90   : > { %648 = vmatpush1.bf16.msra.mxu0 %v3414_v28  ;;  %691 = vmatpush1.bf16.msra.mxu1 %v3416_v29  ;;  %v436_v63 = vld [vmem:[#allocation5 + $0xf8] sm:$0xff]  ;;  %v3427_v0 = vcombine.high %v431_v57, %v435_v58  ;;  %v3426_v4 = vcombine.low %v431_v57, %v435_v58  ;;  %v3882_v5 = vld [vmem:[#allocation7 + $0x204] ss:$16 sps:$4 sm:$0xff]   ;;  %v3880_v7 = vld [vmem:[#allocation7 + $0x200] ss:$16 sps:$4 sm:$0xff]  }
  0x91   : > { %649 = vmatprep.subr.bf16.mxu0 %v3423_v30  ;;  %692 = vmatprep.subr.bf16.mxu1 %v3425_v31  ;;  %v3429_v3 = vcombine.high %v432_v62, %v436_v63  ;;  %v3428_v6 = vcombine.low %v432_v62, %v436_v63  ;;  %v3888_v8 = vld [vmem:[#allocation7 + $0x224] ss:$16 sps:$4 sm:$0xff]   ;;  %v3877_v9 = vld [vmem:[#allocation7] ss:$16 sps:$4 sm:$0xff]  }
  0x92   : > { %v3885_v10 = vld [vmem:[#allocation7 + $0x24] ss:$16 sps:$4 sm:$0xff]   ;;  %v3886_v11 = vld [vmem:[#allocation7 + $0x220] ss:$16 sps:$4 sm:$0xff]  }
  0x93   : > { %v3894_v12 = vld [vmem:[#allocation7 + $0x244] ss:$16 sps:$4 sm:$0xff]   ;;  %v3883_v13 = vld [vmem:[#allocation7 + $0x20] ss:$16 sps:$4 sm:$0xff]  }
  0x94   : > { %650 = vmatpush1.bf16.msra.mxu0 %v3422_v36  ;;  %693 = vmatpush1.bf16.msra.mxu1 %v3424_v39  ;;  %v3891_v14 = vld [vmem:[#allocation7 + $0x44] ss:$16 sps:$4 sm:$0xff]   ;;  %v3892_v15 = vld [vmem:[#allocation7 + $0x240] ss:$16 sps:$4 sm:$0xff]  }
  0x95   : > { %729 = vmatprep.subr.bf16.mxu0 %v3403_v40  ;;  %772 = vmatprep.subr.bf16.mxu1 %v3405_v43  ;;  %v3900_v16 = vld [vmem:[#allocation7 + $0x264] ss:$16 sps:$4 sm:$0xff]   ;;  %v3889_v17 = vld [vmem:[#allocation7 + $0x40] ss:$16 sps:$4 sm:$0xff]  }
  0x96   : > { %v3897_v18 = vld [vmem:[#allocation7 + $0x64] ss:$16 sps:$4 sm:$0xff]   ;;  %v3898_v19 = vld [vmem:[#allocation7 + $0x260] ss:$16 sps:$4 sm:$0xff]  }
  0x97   : > { %3430 = vmatmul.mubr.msk.bf16.vlgmr.msra.gmra.mrb[0].mxu0 %vm639_vm0, %v404_v44  ;;  %3431 = vmatmul.mubr.msk.bf16.vlgmr.msra.gmra.mrb[0].mxu1 %vm639_vm0, %v404_v44  ;;  %v3906_v20 = vld [vmem:[#allocation7 + $0x284] ss:$16 sps:$4 sm:$0xff]   ;;  %v3895_v21 = vld [vmem:[#allocation7 + $0x60] ss:$16 sps:$4 sm:$0xff]  }
  0x98   : > { %730 = vmatpush1.bf16.msra.mxu0 %v3402_v45  ;;  %761 = vmatprep.mubr.bf16.mxu0 %v4533_v1  ;;  %v3903_v22 = vld [vmem:[#allocation7 + $0x84] ss:$16 sps:$4 sm:$0xff]   ;;  %v3901_v23 = vld [vmem:[#allocation7 + $0x80] ss:$16 sps:$4 sm:$0xff]  }
  0x99   : > { %731 = vmatprep.subr.bf16.mxu0 %v3411_v48  ;;  %773 = vmatpush1.bf16.msra.mxu1 %v3404_v51  ;;  %v3904_v24 = vld [vmem:[#allocation7 + $0x280] ss:$16 sps:$4 sm:$0xff]   ;;  %v3912_v25 = vld [vmem:[#allocation7 + $0x2a4] ss:$16 sps:$4 sm:$0xff]  }
  0x9a   : > { %804 = vmatprep.mubr.bf16.mxu1 %v4533_v1  ;;  %774 = vmatprep.subr.bf16.mxu1 %v3413_v52  ;;  %v3879_v1 = vld [vmem:[#allocation7 + $0x4] ss:$16 sps:$4 sm:$0xff]   ;;  %v3910_v27 = vld [vmem:[#allocation7 + $0x2a0] ss:$16 sps:$4 sm:$0xff]  }
  0x9b   : > { %v3909_v26 = vld [vmem:[#allocation7 + $0xa4] ss:$16 sps:$4 sm:$0xff]   ;;  %v3907_v29 = vld [vmem:[#allocation7 + $0xa0] ss:$16 sps:$4 sm:$0xff]  }
  0x9c   : > { %732 = vmatpush1.bf16.msra.mxu0 %v3410_v53  ;;  %v3918_v28 = vld [vmem:[#allocation7 + $0x2c4] ss:$16 sps:$4 sm:$0xff]   ;;  %v3916_v31 = vld [vmem:[#allocation7 + $0x2c0] ss:$16 sps:$4 sm:$0xff]  }
  0x9d   : > { %733 = vmatprep.subr.bf16.mxu0 %v3419_v56  ;;  %775 = vmatpush1.bf16.msra.mxu1 %v3412_v59  ;;  %v3915_v30 = vld [vmem:[#allocation7 + $0xc4] ss:$16 sps:$4 sm:$0xff]   ;;  %v3913_v33 = vld [vmem:[#allocation7 + $0xc0] ss:$16 sps:$4 sm:$0xff]  }
  0x9e   : > { %776 = vmatprep.subr.bf16.mxu1 %v3421_v60  ;;  %v3924_v32 = vld [vmem:[#allocation7 + $0x2e4] ss:$16 sps:$4 sm:$0xff]   ;;  %v3922_v35 = vld [vmem:[#allocation7 + $0x2e0] ss:$16 sps:$4 sm:$0xff]  }
  0x9f   : > { %v3921_v34 = vld [vmem:[#allocation7 + $0xe4] ss:$16 sps:$4 sm:$0xff]   ;;  %v3919_v37 = vld [vmem:[#allocation7 + $0xe0] ss:$16 sps:$4 sm:$0xff]  }
  0xa0   : > { %734 = vmatpush1.bf16.msra.mxu0 %v3418_v61  ;;  %v3930_v36 = vld [vmem:[#allocation7 + $0x304] ss:$16 sps:$4 sm:$0xff]   ;;  %v3928_v39 = vld [vmem:[#allocation7 + $0x300] ss:$16 sps:$4 sm:$0xff]  }
  0xa1   : > { %735 = vmatprep.subr.bf16.mxu0 %v3427_v0  ;;  %777 = vmatpush1.bf16.msra.mxu1 %v3420_v2  ;;  %v3927_v38 = vld [vmem:[#allocation7 + $0x104] ss:$16 sps:$4 sm:$0xff]   ;;  %v3925_v41 = vld [vmem:[#allocation7 + $0x100] ss:$16 sps:$4 sm:$0xff]  }
  0xa2   : > { %778 = vmatprep.subr.bf16.mxu1 %v3429_v3  ;;  %v3936_v40 = vld [vmem:[#allocation7 + $0x324] ss:$16 sps:$4 sm:$0xff]   ;;  %v3934_v43 = vld [vmem:[#allocation7 + $0x320] ss:$16 sps:$4 sm:$0xff]  }
  0xa3   : > { %v3933_v42 = vld [vmem:[#allocation7 + $0x124] ss:$16 sps:$4 sm:$0xff]   ;;  %v3931_v45 = vld [vmem:[#allocation7 + $0x120] ss:$16 sps:$4 sm:$0xff]  }
  0xa4   : > { %736 = vmatpush1.bf16.msra.mxu0 %v3426_v4  ;;  %v3939_v46 = vld [vmem:[#allocation7 + $0x144] ss:$16 sps:$4 sm:$0xff]   ;;  %v3940_v47 = vld [vmem:[#allocation7 + $0x340] ss:$16 sps:$4 sm:$0xff]  }
  0xa5   : > { %2440 = vmatprep.subr.bf16.mxu0 %v3882_v5  ;;  %779 = vmatpush1.bf16.msra.mxu1 %v3428_v6  ;;  %v3948_v48 = vld [vmem:[#allocation7 + $0x364] ss:$16 sps:$4 sm:$0xff]   ;;  %v3937_v49 = vld [vmem:[#allocation7 + $0x140] ss:$16 sps:$4 sm:$0xff]  }
  0xa6   : > { %2397 = vmatprep.subr.bf16.mxu1 %v3879_v1  ;;  %v3945_v50 = vld [vmem:[#allocation7 + $0x164] ss:$16 sps:$4 sm:$0xff]   ;;  %v3946_v51 = vld [vmem:[#allocation7 + $0x360] ss:$16 sps:$4 sm:$0xff]   ;;  %v3978_v1 = vld [vmem:[#allocation7 + $0xc] ss:$16 sps:$4 sm:$0xff]  }
  0xa7   : > { %3432 = vmatmul.mubr.msk.bf16.vlgmr.msra.gmra.mrb[4].mxu0 %vm639_vm0, %v404_v44  ;;  %v3954_v52 = vld [vmem:[#allocation7 + $0x384] ss:$16 sps:$4 sm:$0xff]   ;;  %v3943_v53 = vld [vmem:[#allocation7 + $0x160] ss:$16 sps:$4 sm:$0xff]  }
  0xa8   : > { %2441 = vmatpush1.bf16.msra.mxu0 %v3880_v7  ;;  %3433 = vmatmul.mubr.msk.bf16.vlgmr.msra.gmra.mrb[4].mxu1 %vm639_vm0, %v404_v44  ;;  %v3942_v44 = vld [vmem:[#allocation7 + $0x344] ss:$16 sps:$4 sm:$0xff]   ;;  %v3952_v55 = vld [vmem:[#allocation7 + $0x380] ss:$16 sps:$4 sm:$0xff]   ;;  %v439_v7 = vlaneseq }
  0xa9   : > { %2442 = vmatprep.subr.bf16.mxu0 %v3888_v8  ;;  %2398 = vmatpush1.bf16.msra.mxu1 %v3877_v9  ;;  %v3951_v54 = vld [vmem:[#allocation7 + $0x184] ss:$16 sps:$4 sm:$0xff]   ;;  %v3949_v57 = vld [vmem:[#allocation7 + $0x180] ss:$16 sps:$4 sm:$0xff]  }
  0xaa   : > { %2399 = vmatprep.subr.bf16.mxu1 %v3885_v10  ;;  %v3960_v56 = vld [vmem:[#allocation7 + $0x3a4] ss:$16 sps:$4 sm:$0xff]   ;;  %v3958_v59 = vld [vmem:[#allocation7 + $0x3a0] ss:$16 sps:$4 sm:$0xff]   ;;  %v4790_v8 = vshrl.u32 %v439_v7, 7 }
  0xab   : > { %v3957_v58 = vld [vmem:[#allocation7 + $0x1a4] ss:$16 sps:$4 sm:$0xff]   ;;  %v3955_v60 = vld [vmem:[#allocation7 + $0x1a0] ss:$16 sps:$4 sm:$0xff]  }
  0xac   : > { %2443 = vmatpush1.bf16.msra.mxu0 %v3886_v11  ;;  %v3963_v61 = vld [vmem:[#allocation7 + $0x1c4] ss:$16 sps:$4 sm:$0xff]   ;;  %v3961_v63 = vld [vmem:[#allocation7 + $0x1c0] ss:$16 sps:$4 sm:$0xff]   ;;  %v4793_v9 = vsub.s32 0, %v4790_v8  ;;  %v449_v11 = vsub.s32 2, %v4790_v8 }
  0xad   : > { %2444 = vmatprep.subr.bf16.mxu0 %v3894_v12  ;;  %2400 = vmatpush1.bf16.msra.mxu1 %v3883_v13  ;;  %v3966_v62 = vld [vmem:[#allocation7 + $0x3c4] ss:$16 sps:$4 sm:$0xff]   ;;  %v3964_v0 = vld [vmem:[#allocation7 + $0x3c0] ss:$16 sps:$4 sm:$0xff]   ;;  %v4802_v12 = vsub.s32 1, %v4790_v8  ;;  %v453_v13 = vsub.s32 3, %v4790_v8 }
  0xae   : > { %2401 = vmatprep.subr.bf16.mxu1 %v3891_v14  ;;  %v3969_v2 = vld [vmem:[#allocation7 + $0x1e4] ss:$16 sps:$4 sm:$0xff]   ;;  %v3967_v4 = vld [vmem:[#allocation7 + $0x1e0] ss:$16 sps:$4 sm:$0xff]  }
  0xaf   : > { %v3972_v3 = vld [vmem:[#allocation7 + $0x3e4] ss:$16 sps:$4 sm:$0xff]   ;;  %v3970_v5 = vld [vmem:[#allocation7 + $0x3e0] ss:$16 sps:$4 sm:$0xff]  }
  0xb0   : > { %2445 = vmatpush1.bf16.msra.mxu0 %v3892_v15  ;;  %v3975_v6 = vld [vmem:[#allocation7 + $0x404] ss:$16 sps:$4 sm:$0xff]  }
  0xb1   : > { %2446 = vmatprep.subr.bf16.mxu0 %v3900_v16  ;;  %2402 = vmatpush1.bf16.msra.mxu1 %v3889_v17  ;;  %v4798_v10 = vld [vmem:[%s4896_s2] sm:$0xff] }
  0xb2   : > { %2403 = vmatprep.subr.bf16.mxu1 %v3897_v18  ;;  %v442_v14 = vrot.slane %v4798_v10, %v4793_v9  ;;  %v450_v15 = vrot.slane %v4798_v10, %v449_v11  ;;  %v446_v16 = vrot.slane %v4798_v10, %v4802_v12  ;;  %v454_v17 = vrot.slane %v4798_v10, %v453_v13 }
  0xb4   : > { %2447 = vmatpush1.bf16.msra.mxu0 %v3898_v19 }
  0xb5   : > { %2448 = vmatprep.subr.bf16.mxu0 %v3906_v20  ;;  %2404 = vmatpush1.bf16.msra.mxu1 %v3895_v21 }
  0xb6   : > { %2405 = vmatprep.subr.bf16.mxu1 %v3903_v22 }
  0xb8   : > { %2449 = vmatpush1.bf16.msra.mxu0 %v3904_v24 }
  0xb9   : > { %2450 = vmatprep.subr.bf16.mxu0 %v3912_v25  ;;  %2406 = vmatpush1.bf16.msra.mxu1 %v3901_v23 }
  0xba   : > { %2407 = vmatprep.subr.bf16.mxu1 %v3909_v26 }
  0xbc   : > { %2451 = vmatpush1.bf16.msra.mxu0 %v3910_v27 }
  0xbd   : > { %2452 = vmatprep.subr.bf16.mxu0 %v3918_v28  ;;  %2408 = vmatpush1.bf16.msra.mxu1 %v3907_v29 }
  0xbe   : > { %2409 = vmatprep.subr.bf16.mxu1 %v3915_v30 }
  0xc0   : > { %2453 = vmatpush1.bf16.msra.mxu0 %v3916_v31 }
  0xc1   : > { %2454 = vmatprep.subr.bf16.mxu0 %v3924_v32  ;;  %2410 = vmatpush1.bf16.msra.mxu1 %v3913_v33 }
  0xc2   : > { %2411 = vmatprep.subr.bf16.mxu1 %v3921_v34 }
  0xc4   : > { %2455 = vmatpush1.bf16.msra.mxu0 %v3922_v35 }
  0xc5   : > { %2456 = vmatprep.subr.bf16.mxu0 %v3930_v36  ;;  %2412 = vmatpush1.bf16.msra.mxu1 %v3919_v37 }
  0xc6   : > { %2413 = vmatprep.subr.bf16.mxu1 %v3927_v38 }
  0xc8   : > { %2457 = vmatpush1.bf16.msra.mxu0 %v3928_v39 }
  0xc9   : > { %2458 = vmatprep.subr.bf16.mxu0 %v3936_v40  ;;  %2414 = vmatpush1.bf16.msra.mxu1 %v3925_v41 }
  0xca   : > { %2415 = vmatprep.subr.bf16.mxu1 %v3933_v42 }
  0xcc   : > { %2459 = vmatpush1.bf16.msra.mxu0 %v3934_v43 }
  0xcd   : > { %2460 = vmatprep.subr.bf16.mxu0 %v3942_v44  ;;  %2416 = vmatpush1.bf16.msra.mxu1 %v3931_v45  ;;  %v3976_v45 = vld [vmem:[#allocation7 + $0x8] ss:$16 sps:$4 sm:$0xff]  }
  0xce   : > { %2417 = vmatprep.subr.bf16.mxu1 %v3939_v46 }
  0xd0   : > { %2461 = vmatpush1.bf16.msra.mxu0 %v3940_v47  ;;  %v3973_v47 = vld [vmem:[#allocation7 + $0x400] ss:$16 sps:$4 sm:$0xff]  }
  0xd1   : > { %2462 = vmatprep.subr.bf16.mxu0 %v3948_v48  ;;  %2418 = vmatpush1.bf16.msra.mxu1 %v3937_v49  ;;  %v457_v48 = vsub.s32 4, %v4790_v8  ;;  %v3981_v49 = vld [vmem:[#allocation7 + $0x424] ss:$16 sps:$4 sm:$0xff]  }
  0xd2   : > { %2419 = vmatprep.subr.bf16.mxu1 %v3945_v50  ;;  %v3984_v50 = vld [vmem:[#allocation7 + $0x2c] ss:$16 sps:$4 sm:$0xff]  }
  0xd4   : > { %2463 = vmatpush1.bf16.msra.mxu0 %v3946_v51  ;;  %v461_v51 = vsub.s32 5, %v4790_v8 }
  0xd5   : > { %2464 = vmatprep.subr.bf16.mxu0 %v3954_v52  ;;  %2420 = vmatpush1.bf16.msra.mxu1 %v3943_v53  ;;  %v465_v52 = vsub.s32 6, %v4790_v8  ;;  %v3982_v53 = vld [vmem:[#allocation7 + $0x28] ss:$16 sps:$4 sm:$0xff]  }
  0xd6   : > { %2421 = vmatprep.subr.bf16.mxu1 %v3951_v54  ;;  %v469_v54 = vsub.s32 7, %v4790_v8  ;;  %v2817_v8 = vld [vmem:[%s4900_s6] sm:$0x3] }
  0xd8   : > { %2465 = vmatpush1.bf16.msra.mxu0 %v3952_v55  ;;  %v3979_v55 = vld [vmem:[#allocation7 + $0x420] ss:$16 sps:$4 sm:$0xff]  }
  0xd9   : > { %2466 = vmatprep.subr.bf16.mxu0 %v3960_v56  ;;  %2422 = vmatpush1.bf16.msra.mxu1 %v3949_v57  ;;  %v3990_v56 = vld [vmem:[#allocation7 + $0x4c] ss:$16 sps:$4 sm:$0xff]   ;;  %v458_v57 = vrot.slane %v4798_v10, %v457_v48 }
  0xda   : > { %2423 = vmatprep.subr.bf16.mxu1 %v3957_v58  ;;  %v3987_v58 = vld [vmem:[#allocation7 + $0x444] ss:$16 sps:$4 sm:$0xff]   ;;  %v4014_v48 = vld [vmem:[#allocation7 + $0xcc] ss:$16 sps:$4 sm:$0xff]  }
  0xdc   : > { %2467 = vmatpush1.bf16.msra.mxu0 %v3958_v59  ;;  %v462_v59 = vrot.slane %v4798_v10, %v461_v51  ;;  %v4009_v51 = vld [vmem:[#allocation7 + $0x4c0] ss:$16 sps:$4 sm:$0xff]  }
  0xdd   : > { %2424 = vmatpush1.bf16.msra.mxu1 %v3955_v60  ;;  %2468 = vmatprep.subr.bf16.mxu0 %v3966_v62  ;;  %v466_v60 = vrot.slane %v4798_v10, %v465_v52  ;;  %v4020_v52 = vld [vmem:[#allocation7 + $0xec] ss:$16 sps:$4 sm:$0xff]  }
  0xde   : > { %2425 = vmatprep.subr.bf16.mxu1 %v3963_v61  ;;  %v3988_v61 = vld [vmem:[#allocation7 + $0x48] ss:$16 sps:$4 sm:$0xff]  }
  0xe0   : > { %2469 = vmatpush1.bf16.msra.mxu0 %v3964_v0  ;;  %v3985_v0 = vld [vmem:[#allocation7 + $0x440] ss:$16 sps:$4 sm:$0xff]  }
  0xe1   : > { %2426 = vmatpush1.bf16.msra.mxu1 %v3961_v63  ;;  %2470 = vmatprep.subr.bf16.mxu0 %v3972_v3  ;;  %v470_v63 = vrot.slane %v4798_v10, %v469_v54  ;;  %v4018_v54 = vld [vmem:[#allocation7 + $0xe8] ss:$16 sps:$4 sm:$0xff]  }
  0xe2   : > { %2427 = vmatprep.subr.bf16.mxu1 %v3969_v2  ;;  %v3996_v2 = vld [vmem:[#allocation7 + $0x6c] ss:$16 sps:$4 sm:$0xff]  }
  0xe4   : > { %2471 = vmatpush1.bf16.msra.mxu0 %v3970_v5  ;;  %v3993_v5 = vld [vmem:[#allocation7 + $0x464] ss:$16 sps:$4 sm:$0xff]  }
  0xe5   : > { %2428 = vmatpush1.bf16.msra.mxu1 %v3967_v4  ;;  %2483 = vmatprep.subr.bf16.mxu0 %v3975_v6 }
  0xe6   : > { %2569 = vmatprep.subr.bf16.mxu1 %v3978_v1 }
 0x16a   : > { %v677_v18 = vpop.f32.mrb[0].mxu0  ;;  %v720_v20 = vpop.f32.mrb[0].mxu1 }
 0x16b   : > { %v678_v19 = vadd.f32 %v677_v18, %v442_v14  ;;  %v679_v21 = vpop.f32.mrb[1].mxu0  ;;  %v721_v22 = vadd.f32 %v720_v20, %v450_v15  ;;  %v722_v24 = vpop.f32.mrb[1].mxu1  ;;  %v3994_v20 = vld [vmem:[#allocation7 + $0x68] ss:$16 sps:$4 sm:$0xff]  }
 0x16c   : > { %v680_v23 = vadd.f32 %v679_v21, %v446_v16  ;;  %v681_v25 = vpop.f32.mrb[2].mxu0  ;;  %v723_v26 = vadd.f32 %v722_v24, %v454_v17  ;;  %v724_v28 = vpop.f32.mrb[2].mxu1  ;;  %v4002_v24 = vld [vmem:[#allocation7 + $0x8c] ss:$16 sps:$4 sm:$0xff]  }
 0x16d   : > { %v682_v27 = vadd.f32 %v681_v25, %v442_v14  ;;  %v683_v29 = vpop.f32.mrb[3].mxu0  ;;  %v817_v30 = vmax.f32 %v721_v22, 0.0  ;;  %v725_v31 = vadd.f32 %v724_v28, %v450_v15  ;;  %v726_v33 = vpop.f32.mrb[3].mxu1  ;;  %v815_v34 = vmax.f32 %v678_v19, 0.0  ;;  %v3991_v19 = vld [vmem:[#allocation7 + $0x460] ss:$16 sps:$4 sm:$0xff]  }
 0x16e   : > { %v684_v32 = vadd.f32 %v683_v29, %v446_v16  ;;  %v818_v35 = vmax.f32 %v723_v26, 0.0  ;;  %v727_v37 = vadd.f32 %v726_v33, %v454_v17  ;;  %v816_v38 = vmax.f32 %v680_v23, 0.0  ;;  %v3999_v29 = vld [vmem:[#allocation7 + $0x484] ss:$16 sps:$4 sm:$0xff]  }
 0x16f   : > { %v823_v36 = vmax.f32 %v682_v27, 0.0  ;;  %v825_v39 = vmax.f32 %v725_v31, 0.0 }
 0x170   : > { %v824_v40 = vmax.f32 %v684_v32, 0.0  ;;  %v826_v42 = vmax.f32 %v727_v37, 0.0 }
 0x171   : > { %v4815_v41 = vpack.c.bf16 %v823_v36, %v815_v34  ;;  %v4817_v43 = vpack.c.bf16 %v825_v39, %v817_v30  ;;  %v4008_v39 = vld [vmem:[#allocation7 + $0xac] ss:$16 sps:$4 sm:$0xff]  }
 0x172   : > { %v832_v44 = vpack.c.bf16 %v824_v40, %v816_v38  ;;  %v4819_v46 = vpack.c.bf16 %v826_v42, %v818_v35  ;;  %v4000_v35 = vld [vmem:[#allocation7 + $0x88] ss:$16 sps:$4 sm:$0xff]   ;;  %v3997_v38 = vld [vmem:[#allocation7 + $0x480] ss:$16 sps:$4 sm:$0xff]   ;;  %v4005_v42 = vld [vmem:[#allocation7 + $0x4a4] ss:$16 sps:$4 sm:$0xff]  }
 0x174   : > { %2429 = vmatprep.mubr.bf16.mxu1 %v832_v44  ;;  %2472 = vmatprep.mubr.bf16.mxu0 %v4819_v46 }
 0x175   : > { %2430 = vmatmul.mubr.bf16.vlgmr.msra.gmra.mrb[8].mxu1 %v4815_v41  ;;  %2473 = vmatmul.mubr.bf16.vlgmr.msra.gmra.mrb[8].mxu0 %v4817_v43 }
 0x176   : > { %2570 = vmatpush1.bf16.msra.mxu1 %v3976_v45  ;;  %2484 = vmatpush1.bf16.msra.mxu0 %v3973_v47  ;;  %v4006_v45 = vld [vmem:[#allocation7 + $0xa8] ss:$16 sps:$4 sm:$0xff]   ;;  %v4003_v47 = vld [vmem:[#allocation7 + $0x4a0] ss:$16 sps:$4 sm:$0xff]  }
 0x177   : > { %2601 = vmatprep.mubr.bf16.mxu1 %v832_v44  ;;  %2485 = vmatprep.subr.bf16.mxu0 %v3981_v49  ;;  %v4011_v49 = vld [vmem:[#allocation7 + $0x4c4] ss:$16 sps:$4 sm:$0xff]  }
 0x178   : > { %2571 = vmatprep.subr.bf16.mxu1 %v3984_v50  ;;  %v4012_v50 = vld [vmem:[#allocation7 + $0xc8] ss:$16 sps:$4 sm:$0xff]  }
 0x17a   : > { %2572 = vmatpush1.bf16.msra.mxu1 %v3982_v53  ;;  %v763_v62 = vpop.f32.mrb[4].mxu0  ;;  %2486 = vmatpush1.bf16.msra.mxu0 %v3979_v55  ;;  %v4017_v53 = vld [vmem:[#allocation7 + $0x4e4] ss:$16 sps:$4 sm:$0xff]   ;;  %v4015_v55 = vld [vmem:[#allocation7 + $0x4e0] ss:$16 sps:$4 sm:$0xff]  }
 0x17b   : > { %2573 = vmatprep.subr.bf16.mxu1 %v3990_v56  ;;  %v764_v3 = vadd.f32 %v763_v62, %v458_v57  ;;  %v765_v4 = vpop.f32.mrb[5].mxu0  ;;  %2487 = vmatprep.subr.bf16.mxu0 %v3987_v58  ;;  %v806_v7 = vpop.f32.mrb[4].mxu1  ;;  %v4026_v56 = vld [vmem:[#allocation7 + $0x10c] ss:$16 sps:$4 sm:$0xff]   ;;  %v4024_v58 = vld [vmem:[#allocation7 + $0x108] ss:$16 sps:$4 sm:$0xff]  }
 0x17c   : > { %v766_v6 = vadd.f32 %v765_v4, %v462_v59  ;;  %v767_v1 = vpop.f32.mrb[6].mxu0  ;;  %v807_v17 = vadd.f32 %v806_v7, %v466_v60  ;;  %v808_v18 = vpop.f32.mrb[5].mxu1  ;;  %v4030_v62 = vld [vmem:[#allocation7 + $0x128] ss:$16 sps:$4 sm:$0xff]   ;;  %v4033_v4 = vld [vmem:[#allocation7 + $0x540] ss:$16 sps:$4 sm:$0xff]  }
 0x17d   : > { %v819_v14 = vmax.f32 %v764_v3, 0.0  ;;  %v768_v15 = vadd.f32 %v767_v1, %v458_v57  ;;  %v769_v16 = vpop.f32.mrb[7].mxu0  ;;  %v809_v22 = vadd.f32 %v808_v18, %v470_v63  ;;  %v810_v23 = vpop.f32.mrb[6].mxu1  ;;  %v4023_v57 = vld [vmem:[#allocation7 + $0x504] ss:$16 sps:$4 sm:$0xff]  }
 0x17e   : > { %2574 = vmatpush1.bf16.msra.mxu1 %v3988_v61  ;;  %v820_v10 = vmax.f32 %v766_v6, 0.0  ;;  %v770_v21 = vadd.f32 %v769_v16, %v462_v59  ;;  %2488 = vmatpush1.bf16.msra.mxu0 %v3985_v0  ;;  %v821_v26 = vmax.f32 %v807_v17, 0.0  ;;  %v811_v27 = vadd.f32 %v810_v23, %v466_v60  ;;  %v812_v28 = vpop.f32.mrb[7].mxu1  ;;  %v4021_v59 = vld [vmem:[#allocation7 + $0x500] ss:$16 sps:$4 sm:$0xff]  }
 0x17f   : > { %2575 = vmatprep.subr.bf16.mxu1 %v3996_v2  ;;  %v827_v25 = vmax.f32 %v768_v15, 0.0  ;;  %2489 = vmatprep.subr.bf16.mxu0 %v3993_v5  ;;  %v822_v31 = vmax.f32 %v809_v22, 0.0  ;;  %v813_v32 = vadd.f32 %v812_v28, %v470_v63  ;;  %v4032_v60 = vld [vmem:[#allocation7 + $0x12c] ss:$16 sps:$4 sm:$0xff]   ;;  %v4029_v61 = vld [vmem:[#allocation7 + $0x524] ss:$16 sps:$4 sm:$0xff]  }
 0x180   : > { %v828_v30 = vmax.f32 %v770_v21, 0.0  ;;  %v829_v34 = vmax.f32 %v811_v27, 0.0  ;;  %v4027_v63 = vld [vmem:[#allocation7 + $0x520] ss:$16 sps:$4 sm:$0xff]   ;;  %v4038_v0 = vld [vmem:[#allocation7 + $0x14c] ss:$16 sps:$4 sm:$0xff]  }
 0x181   : > { %v4832_v33 = vpack.c.bf16 %v827_v25, %v819_v14  ;;  %v830_v37 = vmax.f32 %v813_v32, 0.0  ;;  %v4035_v2 = vld [vmem:[#allocation7 + $0x544] ss:$16 sps:$4 sm:$0xff]   ;;  %v4036_v3 = vld [vmem:[#allocation7 + $0x148] ss:$16 sps:$4 sm:$0xff]  }
 0x182   : > { %2576 = vmatpush1.bf16.msra.mxu1 %v3994_v20  ;;  %v4834_v36 = vpack.c.bf16 %v828_v30, %v820_v10  ;;  %2490 = vmatpush1.bf16.msra.mxu0 %v3991_v19  ;;  %v4836_v40 = vpack.c.bf16 %v829_v34, %v821_v26  ;;  %v4044_v5 = vld [vmem:[#allocation7 + $0x16c] ss:$16 sps:$4 sm:$0xff]   ;;  %v4041_v6 = vld [vmem:[#allocation7 + $0x564] ss:$16 sps:$4 sm:$0xff]   ;;  %v4042_v1 = vld [vmem:[#allocation7 + $0x168] ss:$16 sps:$4 sm:$0xff]  }
 0x183   : > { %2577 = vmatprep.subr.bf16.mxu1 %v4002_v24  ;;  %2491 = vmatprep.subr.bf16.mxu0 %v3999_v29  ;;  %v4839_v44 = vpack.c.bf16 %v830_v37, %v822_v31  ;;  %v4039_v7 = vld [vmem:[#allocation7 + $0x560] ss:$16 sps:$4 sm:$0xff]   ;;  %v4050_v14 = vld [vmem:[#allocation7 + $0x18c] ss:$16 sps:$4 sm:$0xff]   ;;  %v4047_v15 = vld [vmem:[#allocation7 + $0x584] ss:$16 sps:$4 sm:$0xff]  }
 0x184   : > { %2515 = vmatprep.mubr.bf16.mxu0 %v4834_v36  ;;  %v4048_v16 = vld [vmem:[#allocation7 + $0x188] ss:$16 sps:$4 sm:$0xff]   ;;  %v4045_v17 = vld [vmem:[#allocation7 + $0x580] ss:$16 sps:$4 sm:$0xff]   ;;  %v4056_v18 = vld [vmem:[#allocation7 + $0x1ac] ss:$16 sps:$4 sm:$0xff]  }
 0x185   : > { %v4053_v19 = vld [vmem:[#allocation7 + $0x5a4] ss:$16 sps:$4 sm:$0xff]   ;;  %v4054_v20 = vld [vmem:[#allocation7 + $0x1a8] ss:$16 sps:$4 sm:$0xff]   ;;  %v4051_v10 = vld [vmem:[#allocation7 + $0x5a0] ss:$16 sps:$4 sm:$0xff]  }
 0x186   : > { %2578 = vmatpush1.bf16.msra.mxu1 %v4000_v35  ;;  %2492 = vmatpush1.bf16.msra.mxu0 %v3997_v38  ;;  %v4062_v21 = vld [vmem:[#allocation7 + $0x1cc] ss:$16 sps:$4 sm:$0xff]   ;;  %v4059_v22 = vld [vmem:[#allocation7 + $0x5c4] ss:$16 sps:$4 sm:$0xff]   ;;  %v4060_v23 = vld [vmem:[#allocation7 + $0x1c8] ss:$16 sps:$4 sm:$0xff]  }
 0x187   : > { %2579 = vmatprep.subr.bf16.mxu1 %v4008_v39  ;;  %2493 = vmatprep.subr.bf16.mxu0 %v4005_v42  ;;  %v4057_v24 = vld [vmem:[#allocation7 + $0x5c0] ss:$16 sps:$4 sm:$0xff]   ;;  %v4068_v25 = vld [vmem:[#allocation7 + $0x1ec] ss:$16 sps:$4 sm:$0xff]   ;;  %v4065_v26 = vld [vmem:[#allocation7 + $0x5e4] ss:$16 sps:$4 sm:$0xff]  }
 0x188   : > { %v4066_v27 = vld [vmem:[#allocation7 + $0x1e8] ss:$16 sps:$4 sm:$0xff]   ;;  %v4063_v28 = vld [vmem:[#allocation7 + $0x5e0] ss:$16 sps:$4 sm:$0xff]   ;;  %v4074_v29 = vld [vmem:[#allocation7 + $0x20c] ss:$16 sps:$4 sm:$0xff]  }
 0x189   : > { %v4071_v30 = vld [vmem:[#allocation7 + $0x604] ss:$16 sps:$4 sm:$0xff]   ;;  %v4072_v31 = vld [vmem:[#allocation7 + $0x208] ss:$16 sps:$4 sm:$0xff]   ;;  %v4069_v32 = vld [vmem:[#allocation7 + $0x600] ss:$16 sps:$4 sm:$0xff]  }
 0x18a   : > { %2580 = vmatpush1.bf16.msra.mxu1 %v4006_v45  ;;  %2494 = vmatpush1.bf16.msra.mxu0 %v4003_v47  ;;  %v4077_v34 = vld [vmem:[#allocation7 + $0x624] ss:$16 sps:$4 sm:$0xff]   ;;  %v4080_v35 = vld [vmem:[#allocation7 + $0x22c] ss:$16 sps:$4 sm:$0xff]   ;;  %v4078_v37 = vld [vmem:[#allocation7 + $0x228] ss:$16 sps:$4 sm:$0xff]  }
 0x18b   : > { %2581 = vmatprep.subr.bf16.mxu1 %v4014_v48  ;;  %2495 = vmatprep.subr.bf16.mxu0 %v4011_v49  ;;  %v4075_v38 = vld [vmem:[#allocation7 + $0x620] ss:$16 sps:$4 sm:$0xff]   ;;  %v4086_v39 = vld [vmem:[#allocation7 + $0x24c] ss:$16 sps:$4 sm:$0xff]   ;;  %v4083_v42 = vld [vmem:[#allocation7 + $0x644] ss:$16 sps:$4 sm:$0xff]  }
 0x18c   : > { %v4084_v45 = vld [vmem:[#allocation7 + $0x248] ss:$16 sps:$4 sm:$0xff]   ;;  %v4081_v47 = vld [vmem:[#allocation7 + $0x640] ss:$16 sps:$4 sm:$0xff]   ;;  %v4089_v48 = vld [vmem:[#allocation7 + $0x664] ss:$16 sps:$4 sm:$0xff]  }
 0x18d   : > { %v4090_v49 = vld [vmem:[#allocation7 + $0x268] ss:$16 sps:$4 sm:$0xff]  }
 0x18e   : > { %2582 = vmatpush1.bf16.msra.mxu1 %v4012_v50  ;;  %2496 = vmatpush1.bf16.msra.mxu0 %v4009_v51  ;;  %v4087_v50 = vld [vmem:[#allocation7 + $0x660] ss:$16 sps:$4 sm:$0xff]   ;;  %v4095_v51 = vld [vmem:[#allocation7 + $0x684] ss:$16 sps:$4 sm:$0xff]  }
 0x18f   : > { %2583 = vmatprep.subr.bf16.mxu1 %v4020_v52  ;;  %2497 = vmatprep.subr.bf16.mxu0 %v4017_v53  ;;  %v4096_v52 = vld [vmem:[#allocation7 + $0x288] ss:$16 sps:$4 sm:$0xff]   ;;  %v4093_v53 = vld [vmem:[#allocation7 + $0x680] ss:$16 sps:$4 sm:$0xff]  }
 0x192   : > { %2584 = vmatpush1.bf16.msra.mxu1 %v4018_v54  ;;  %2498 = vmatpush1.bf16.msra.mxu0 %v4015_v55  ;;  %v4104_v54 = vld [vmem:[#allocation7 + $0x2ac] ss:$16 sps:$4 sm:$0xff]   ;;  %v4101_v55 = vld [vmem:[#allocation7 + $0x6a4] ss:$16 sps:$4 sm:$0xff]  }
 0x193   : > { %2585 = vmatprep.subr.bf16.mxu1 %v4026_v56  ;;  %2499 = vmatprep.subr.bf16.mxu0 %v4023_v57  ;;  %v4102_v56 = vld [vmem:[#allocation7 + $0x2a8] ss:$16 sps:$4 sm:$0xff]   ;;  %v4099_v57 = vld [vmem:[#allocation7 + $0x6a0] ss:$16 sps:$4 sm:$0xff]  }
 0x196   : > { %2586 = vmatpush1.bf16.msra.mxu1 %v4024_v58  ;;  %2500 = vmatpush1.bf16.msra.mxu0 %v4021_v59  ;;  %v4110_v58 = vld [vmem:[#allocation7 + $0x2cc] ss:$16 sps:$4 sm:$0xff]   ;;  %v4107_v59 = vld [vmem:[#allocation7 + $0x6c4] ss:$16 sps:$4 sm:$0xff]  }
 0x197   : > { %2587 = vmatprep.subr.bf16.mxu1 %v4032_v60  ;;  %2501 = vmatprep.subr.bf16.mxu0 %v4029_v61  ;;  %v4108_v60 = vld [vmem:[#allocation7 + $0x2c8] ss:$16 sps:$4 sm:$0xff]   ;;  %v4105_v61 = vld [vmem:[#allocation7 + $0x6c0] ss:$16 sps:$4 sm:$0xff]  }
 0x19a   : > { %2588 = vmatpush1.bf16.msra.mxu1 %v4030_v62  ;;  %2502 = vmatpush1.bf16.msra.mxu0 %v4027_v63  ;;  %v4116_v62 = vld [vmem:[#allocation7 + $0x2ec] ss:$16 sps:$4 sm:$0xff]   ;;  %v4113_v63 = vld [vmem:[#allocation7 + $0x6e4] ss:$16 sps:$4 sm:$0xff]  }
 0x19b   : > { %2589 = vmatprep.subr.bf16.mxu1 %v4038_v0  ;;  %2503 = vmatprep.subr.bf16.mxu0 %v4035_v2  ;;  %v4114_v0 = vld [vmem:[#allocation7 + $0x2e8] ss:$16 sps:$4 sm:$0xff]   ;;  %v4111_v2 = vld [vmem:[#allocation7 + $0x6e0] ss:$16 sps:$4 sm:$0xff]  }
 0x19e   : > { %2590 = vmatpush1.bf16.msra.mxu1 %v4036_v3  ;;  %2504 = vmatpush1.bf16.msra.mxu0 %v4033_v4  ;;  %v4122_v3 = vld [vmem:[#allocation7 + $0x30c] ss:$16 sps:$4 sm:$0xff]   ;;  %v4119_v4 = vld [vmem:[#allocation7 + $0x704] ss:$16 sps:$4 sm:$0xff]  }
 0x19f   : > { %2591 = vmatprep.subr.bf16.mxu1 %v4044_v5  ;;  %2505 = vmatprep.subr.bf16.mxu0 %v4041_v6  ;;  %v4120_v5 = vld [vmem:[#allocation7 + $0x308] ss:$16 sps:$4 sm:$0xff]   ;;  %v4117_v6 = vld [vmem:[#allocation7 + $0x700] ss:$16 sps:$4 sm:$0xff]  }
 0x1a2   : > { %2592 = vmatpush1.bf16.msra.mxu1 %v4042_v1  ;;  %2506 = vmatpush1.bf16.msra.mxu0 %v4039_v7  ;;  %v4128_v1 = vld [vmem:[#allocation7 + $0x32c] ss:$16 sps:$4 sm:$0xff]   ;;  %v4125_v7 = vld [vmem:[#allocation7 + $0x724] ss:$16 sps:$4 sm:$0xff]  }
 0x1a3   : > { %2593 = vmatprep.subr.bf16.mxu1 %v4050_v14  ;;  %2507 = vmatprep.subr.bf16.mxu0 %v4047_v15  ;;  %v4126_v14 = vld [vmem:[#allocation7 + $0x328] ss:$16 sps:$4 sm:$0xff]   ;;  %v4123_v15 = vld [vmem:[#allocation7 + $0x720] ss:$16 sps:$4 sm:$0xff]  }
 0x1a6   : > { %2594 = vmatpush1.bf16.msra.mxu1 %v4048_v16  ;;  %2508 = vmatpush1.bf16.msra.mxu0 %v4045_v17  ;;  %v4134_v16 = vld [vmem:[#allocation7 + $0x34c] ss:$16 sps:$4 sm:$0xff]   ;;  %v4131_v17 = vld [vmem:[#allocation7 + $0x744] ss:$16 sps:$4 sm:$0xff]  }
 0x1a7   : > { %2595 = vmatprep.subr.bf16.mxu1 %v4056_v18  ;;  %2509 = vmatprep.subr.bf16.mxu0 %v4053_v19  ;;  %v4132_v18 = vld [vmem:[#allocation7 + $0x348] ss:$16 sps:$4 sm:$0xff]   ;;  %v4129_v19 = vld [vmem:[#allocation7 + $0x740] ss:$16 sps:$4 sm:$0xff]  }
 0x1aa   : > { %2596 = vmatpush1.bf16.msra.mxu1 %v4054_v20  ;;  %2510 = vmatpush1.bf16.msra.mxu0 %v4051_v10  ;;  %v4140_v20 = vld [vmem:[#allocation7 + $0x36c] ss:$16 sps:$4 sm:$0xff]   ;;  %v4137_v10 = vld [vmem:[#allocation7 + $0x764] ss:$16 sps:$4 sm:$0xff]  }
 0x1ab   : > { %2597 = vmatprep.subr.bf16.mxu1 %v4062_v21  ;;  %2511 = vmatprep.subr.bf16.mxu0 %v4059_v22  ;;  %v4138_v21 = vld [vmem:[#allocation7 + $0x368] ss:$16 sps:$4 sm:$0xff]   ;;  %v4135_v22 = vld [vmem:[#allocation7 + $0x760] ss:$16 sps:$4 sm:$0xff]  }
 0x1ae   : > { %2598 = vmatpush1.bf16.msra.mxu1 %v4060_v23  ;;  %2512 = vmatpush1.bf16.msra.mxu0 %v4057_v24  ;;  %v4146_v23 = vld [vmem:[#allocation7 + $0x38c] ss:$16 sps:$4 sm:$0xff]   ;;  %v4143_v24 = vld [vmem:[#allocation7 + $0x784] ss:$16 sps:$4 sm:$0xff]  }
 0x1af   : > { %2599 = vmatprep.subr.bf16.mxu1 %v4068_v25  ;;  %2513 = vmatprep.subr.bf16.mxu0 %v4065_v26  ;;  %v4144_v25 = vld [vmem:[#allocation7 + $0x388] ss:$16 sps:$4 sm:$0xff]   ;;  %v4141_v26 = vld [vmem:[#allocation7 + $0x780] ss:$16 sps:$4 sm:$0xff]  }
 0x1b2   : > { %2600 = vmatpush1.bf16.msra.mxu1 %v4066_v27  ;;  %2514 = vmatpush1.bf16.msra.mxu0 %v4063_v28  ;;  %v4152_v27 = vld [vmem:[#allocation7 + $0x3ac] ss:$16 sps:$4 sm:$0xff]   ;;  %v4149_v28 = vld [vmem:[#allocation7 + $0x7a4] ss:$16 sps:$4 sm:$0xff]  }
 0x1b3   : > { %2612 = vmatprep.subr.bf16.mxu1 %v4074_v29  ;;  %2526 = vmatprep.subr.bf16.mxu0 %v4071_v30  ;;  %v4150_v29 = vld [vmem:[#allocation7 + $0x3a8] ss:$16 sps:$4 sm:$0xff]   ;;  %v4147_v30 = vld [vmem:[#allocation7 + $0x7a0] ss:$16 sps:$4 sm:$0xff]  }
 0x1b5   : > { %2602 = vmatmul.mubr.bf16.vlgmr.msra.gmra.mrb[12].mxu1 %v4815_v41  ;;  %2516 = vmatmul.mubr.bf16.vlgmr.msra.gmra.mrb[8].mxu0 %v4832_v33  ;;  %v4092_v41 = vld [vmem:[#allocation7 + $0x26c] ss:$16 sps:$4 sm:$0xff]  }
 0x1b6   : > { %2613 = vmatpush1.bf16.msra.mxu1 %v4072_v31  ;;  %2527 = vmatpush1.bf16.msra.mxu0 %v4069_v32  ;;  %v4158_v31 = vld [vmem:[#allocation7 + $0x3cc] ss:$16 sps:$4 sm:$0xff]   ;;  %v4155_v32 = vld [vmem:[#allocation7 + $0x7c4] ss:$16 sps:$4 sm:$0xff]  }
 0x1b7   : > { %2644 = vmatprep.mubr.bf16.mxu1 %v4819_v46  ;;  %2528 = vmatprep.subr.bf16.mxu0 %v4077_v34  ;;  %v4098_v46 = vld [vmem:[#allocation7 + $0x28c] ss:$16 sps:$4 sm:$0xff]   ;;  %v4156_v34 = vld [vmem:[#allocation7 + $0x3c8] ss:$16 sps:$4 sm:$0xff]  }
 0x1b8   : > { %2614 = vmatprep.subr.bf16.mxu1 %v4080_v35  ;;  %2558 = vmatprep.mubr.bf16.mxu0 %v4839_v44  ;;  %v4153_v35 = vld [vmem:[#allocation7 + $0x7c0] ss:$16 sps:$4 sm:$0xff]  }
 0x1ba   : > { %2615 = vmatpush1.bf16.msra.mxu1 %v4078_v37  ;;  %2529 = vmatpush1.bf16.msra.mxu0 %v4075_v38  ;;  %v4164_v37 = vld [vmem:[#allocation7 + $0x3ec] ss:$16 sps:$4 sm:$0xff]   ;;  %v4161_v38 = vld [vmem:[#allocation7 + $0x7e4] ss:$16 sps:$4 sm:$0xff]  }
 0x1bb   : > { %2616 = vmatprep.subr.bf16.mxu1 %v4086_v39  ;;  %2530 = vmatprep.subr.bf16.mxu0 %v4083_v42  ;;  %v4162_v39 = vld [vmem:[#allocation7 + $0x3e8] ss:$16 sps:$4 sm:$0xff]   ;;  %v4159_v42 = vld [vmem:[#allocation7 + $0x7e0] ss:$16 sps:$4 sm:$0xff]  }
 0x1be   : > { %2617 = vmatpush1.bf16.msra.mxu1 %v4084_v45  ;;  %2531 = vmatpush1.bf16.msra.mxu0 %v4081_v47  ;;  %v4167_v45 = vld [vmem:[#allocation7 + $0x40c] ss:$16 sps:$4 sm:$0xff]   ;;  %v4165_v47 = vld [vmem:[#allocation7 + $0x408] ss:$16 sps:$4 sm:$0xff]  }
 0x1bf   : > { %2618 = vmatprep.subr.bf16.mxu1 %v4092_v41  ;;  %2532 = vmatprep.subr.bf16.mxu0 %v4089_v48  ;;  %v4170_v41 = vld [vmem:[#allocation7 + $0x42c] ss:$16 sps:$4 sm:$0xff]   ;;  %v4261_v48 = vld [vmem:[#allocation8] ss:$8 sps:$4 sm:$0xff]  }
 0x1c2   : > { %2619 = vmatpush1.bf16.msra.mxu1 %v4090_v49  ;;  %2533 = vmatpush1.bf16.msra.mxu0 %v4087_v50  ;;  %v4263_v49 = vld [vmem:[#allocation8 + $0x4] ss:$8 sps:$4 sm:$0xff]   ;;  %v4168_v50 = vld [vmem:[#allocation7 + $0x428] ss:$16 sps:$4 sm:$0xff]  }
 0x1c3   : > { %2620 = vmatprep.subr.bf16.mxu1 %v4098_v46  ;;  %2534 = vmatprep.subr.bf16.mxu0 %v4095_v51  ;;  %v4266_v46 = vld [vmem:[#allocation8 + $0x14] ss:$8 sps:$4 sm:$0xff]  }
 0x1c4   : > { %v4173_v51 = vld [vmem:[#allocation7 + $0x44c] ss:$16 sps:$4 sm:$0xff]  }
 0x1c6   : > { %2621 = vmatpush1.bf16.msra.mxu1 %v4096_v52  ;;  %2535 = vmatpush1.bf16.msra.mxu0 %v4093_v53  ;;  %v4264_v52 = vld [vmem:[#allocation8 + $0x10] ss:$8 sps:$4 sm:$0xff]  }
 0x1c7   : > { %2622 = vmatprep.subr.bf16.mxu1 %v4104_v54  ;;  %2536 = vmatprep.subr.bf16.mxu0 %v4101_v55  ;;  %v4171_v53 = vld [vmem:[#allocation7 + $0x448] ss:$16 sps:$4 sm:$0xff]   ;;  %v4269_v54 = vld [vmem:[#allocation8 + $0x24] ss:$8 sps:$4 sm:$0xff]  }
 0x1c8   : > { %v4267_v55 = vld [vmem:[#allocation8 + $0x20] ss:$8 sps:$4 sm:$0xff]  }
 0x1ca   : > { %2623 = vmatpush1.bf16.msra.mxu1 %v4102_v56  ;;  %2537 = vmatpush1.bf16.msra.mxu0 %v4099_v57  ;;  %v4174_v56 = vld [vmem:[#allocation7 + $0x468] ss:$16 sps:$4 sm:$0xff]   ;;  %v4272_v57 = vld [vmem:[#allocation8 + $0x34] ss:$8 sps:$4 sm:$0xff]  }
 0x1cb   : > { %2624 = vmatprep.subr.bf16.mxu1 %v4110_v58  ;;  %2538 = vmatprep.subr.bf16.mxu0 %v4107_v59  ;;  %v4179_v58 = vld [vmem:[#allocation7 + $0x48c] ss:$16 sps:$4 sm:$0xff]   ;;  %v4177_v59 = vld [vmem:[#allocation7 + $0x488] ss:$16 sps:$4 sm:$0xff]  }
 0x1ce   : > { %2625 = vmatpush1.bf16.msra.mxu1 %v4108_v60  ;;  %2539 = vmatpush1.bf16.msra.mxu0 %v4105_v61  ;;  %v4275_v60 = vld [vmem:[#allocation8 + $0x44] ss:$8 sps:$4 sm:$0xff]  }
 0x1cf   : > { %2626 = vmatprep.subr.bf16.mxu1 %v4116_v62  ;;  %2540 = vmatprep.subr.bf16.mxu0 %v4113_v63  ;;  %v4182_v61 = vld [vmem:[#allocation7 + $0x4ac] ss:$16 sps:$4 sm:$0xff]   ;;  %v4273_v62 = vld [vmem:[#allocation8 + $0x40] ss:$8 sps:$4 sm:$0xff]  }
 0x1d0   : > { %v4180_v63 = vld [vmem:[#allocation7 + $0x4a8] ss:$16 sps:$4 sm:$0xff]  }
 0x1d2   : > { %2627 = vmatpush1.bf16.msra.mxu1 %v4114_v0  ;;  %2541 = vmatpush1.bf16.msra.mxu0 %v4111_v2  ;;  %v4278_v0 = vld [vmem:[#allocation8 + $0x54] ss:$8 sps:$4 sm:$0xff]  }
 0x1d3   : > { %2628 = vmatprep.subr.bf16.mxu1 %v4122_v3  ;;  %2542 = vmatprep.subr.bf16.mxu0 %v4119_v4  ;;  %v4185_v2 = vld [vmem:[#allocation7 + $0x4cc] ss:$16 sps:$4 sm:$0xff]   ;;  %v4276_v3 = vld [vmem:[#allocation8 + $0x50] ss:$8 sps:$4 sm:$0xff]  }
 0x1d4   : > { %v4183_v4 = vld [vmem:[#allocation7 + $0x4c8] ss:$16 sps:$4 sm:$0xff]  }
 0x1d6   : > { %2629 = vmatpush1.bf16.msra.mxu1 %v4120_v5  ;;  %2543 = vmatpush1.bf16.msra.mxu0 %v4117_v6  ;;  %v4281_v5 = vld [vmem:[#allocation8 + $0x64] ss:$8 sps:$4 sm:$0xff]  }
 0x1d7   : > { %2630 = vmatprep.subr.bf16.mxu1 %v4128_v1  ;;  %2544 = vmatprep.subr.bf16.mxu0 %v4125_v7  ;;  %v4188_v6 = vld [vmem:[#allocation7 + $0x4ec] ss:$16 sps:$4 sm:$0xff]   ;;  %v4279_v1 = vld [vmem:[#allocation8 + $0x60] ss:$8 sps:$4 sm:$0xff]  }
 0x1d8   : > { %v4186_v7 = vld [vmem:[#allocation7 + $0x4e8] ss:$16 sps:$4 sm:$0xff]  }
 0x1da   : > { %2631 = vmatpush1.bf16.msra.mxu1 %v4126_v14  ;;  %2545 = vmatpush1.bf16.msra.mxu0 %v4123_v15  ;;  %v4284_v14 = vld [vmem:[#allocation8 + $0x74] ss:$8 sps:$4 sm:$0xff]  }
 0x1db   : > { %2632 = vmatprep.subr.bf16.mxu1 %v4134_v16  ;;  %2546 = vmatprep.subr.bf16.mxu0 %v4131_v17  ;;  %v4191_v15 = vld [vmem:[#allocation7 + $0x50c] ss:$16 sps:$4 sm:$0xff]   ;;  %v4282_v16 = vld [vmem:[#allocation8 + $0x70] ss:$8 sps:$4 sm:$0xff]  }
 0x1dc   : > { %v4189_v17 = vld [vmem:[#allocation7 + $0x508] ss:$16 sps:$4 sm:$0xff]  }
 0x1de   : > { %2633 = vmatpush1.bf16.msra.mxu1 %v4132_v18  ;;  %2547 = vmatpush1.bf16.msra.mxu0 %v4129_v19  ;;  %v4287_v18 = vld [vmem:[#allocation8 + $0x84] ss:$8 sps:$4 sm:$0xff]  }
 0x1df   : > { %2634 = vmatprep.subr.bf16.mxu1 %v4140_v20  ;;  %2548 = vmatprep.subr.bf16.mxu0 %v4137_v10  ;;  %v4194_v19 = vld [vmem:[#allocation7 + $0x52c] ss:$16 sps:$4 sm:$0xff]   ;;  %v4285_v20 = vld [vmem:[#allocation8 + $0x80] ss:$8 sps:$4 sm:$0xff]  }
 0x1e0   : > { %v4192_v10 = vld [vmem:[#allocation7 + $0x528] ss:$16 sps:$4 sm:$0xff]  }
 0x1e2   : > { %2635 = vmatpush1.bf16.msra.mxu1 %v4138_v21  ;;  %2549 = vmatpush1.bf16.msra.mxu0 %v4135_v22  ;;  %v4290_v21 = vld [vmem:[#allocation8 + $0x94] ss:$8 sps:$4 sm:$0xff]  }
 0x1e3   : > { %2636 = vmatprep.subr.bf16.mxu1 %v4146_v23  ;;  %2550 = vmatprep.subr.bf16.mxu0 %v4143_v24  ;;  %v4197_v22 = vld [vmem:[#allocation7 + $0x54c] ss:$16 sps:$4 sm:$0xff]   ;;  %v4288_v23 = vld [vmem:[#allocation8 + $0x90] ss:$8 sps:$4 sm:$0xff]  }
 0x1e4   : > { %v4195_v24 = vld [vmem:[#allocation7 + $0x548] ss:$16 sps:$4 sm:$0xff]  }
 0x1e6   : > { %2637 = vmatpush1.bf16.msra.mxu1 %v4144_v25  ;;  %2551 = vmatpush1.bf16.msra.mxu0 %v4141_v26  ;;  %v4293_v25 = vld [vmem:[#allocation8 + $0xa4] ss:$8 sps:$4 sm:$0xff]  }
 0x1e7   : > { %2638 = vmatprep.subr.bf16.mxu1 %v4152_v27  ;;  %2552 = vmatprep.subr.bf16.mxu0 %v4149_v28  ;;  %v4200_v26 = vld [vmem:[#allocation7 + $0x56c] ss:$16 sps:$4 sm:$0xff]   ;;  %v4291_v27 = vld [vmem:[#allocation8 + $0xa0] ss:$8 sps:$4 sm:$0xff]  }
 0x1e8   : > { %v4198_v28 = vld [vmem:[#allocation7 + $0x568] ss:$16 sps:$4 sm:$0xff]  }
 0x1ea   : > { %2639 = vmatpush1.bf16.msra.mxu1 %v4150_v29  ;;  %2553 = vmatpush1.bf16.msra.mxu0 %v4147_v30  ;;  %v4296_v29 = vld [vmem:[#allocation8 + $0xb4] ss:$8 sps:$4 sm:$0xff]  }
 0x1eb   : > { %2640 = vmatprep.subr.bf16.mxu1 %v4158_v31  ;;  %2554 = vmatprep.subr.bf16.mxu0 %v4155_v32  ;;  %v4203_v30 = vld [vmem:[#allocation7 + $0x58c] ss:$16 sps:$4 sm:$0xff]   ;;  %v4294_v31 = vld [vmem:[#allocation8 + $0xb0] ss:$8 sps:$4 sm:$0xff]  }
 0x1ec   : > { %v4201_v32 = vld [vmem:[#allocation7 + $0x588] ss:$16 sps:$4 sm:$0xff]  }
 0x1ee   : > { %2641 = vmatpush1.bf16.msra.mxu1 %v4156_v34  ;;  %2555 = vmatpush1.bf16.msra.mxu0 %v4153_v35  ;;  %v4299_v34 = vld [vmem:[#allocation8 + $0xc4] ss:$8 sps:$4 sm:$0xff]  }
 0x1ef   : > { %2642 = vmatprep.subr.bf16.mxu1 %v4164_v37  ;;  %2556 = vmatprep.subr.bf16.mxu0 %v4161_v38  ;;  %v4206_v35 = vld [vmem:[#allocation7 + $0x5ac] ss:$16 sps:$4 sm:$0xff]   ;;  %v4297_v37 = vld [vmem:[#allocation8 + $0xc0] ss:$8 sps:$4 sm:$0xff]  }
 0x1f0   : > { %v4204_v38 = vld [vmem:[#allocation7 + $0x5a8] ss:$16 sps:$4 sm:$0xff]  }
 0x1f2   : > { %2643 = vmatpush1.bf16.msra.mxu1 %v4162_v39  ;;  %2557 = vmatpush1.bf16.msra.mxu0 %v4159_v42  ;;  %v4302_v39 = vld [vmem:[#allocation8 + $0xd4] ss:$8 sps:$4 sm:$0xff]  }
 0x1f3   : > { %2655 = vmatprep.subr.bf16.mxu1 %v4167_v45  ;;  %3149 = vmatprep.subr.bf16.mxu0 %v4263_v49  ;;  %v4209_v42 = vld [vmem:[#allocation7 + $0x5cc] ss:$16 sps:$4 sm:$0xff]   ;;  %v4300_v45 = vld [vmem:[#allocation8 + $0xd0] ss:$8 sps:$4 sm:$0xff]  }
 0x1f4   : > { %v4215_v49 = vld [vmem:[#allocation7 + $0x60c] ss:$16 sps:$4 sm:$0xff]  }
 0x1f5   : > { %2645 = vmatmul.mubr.bf16.vlgmr.msra.gmra.mrb[12].mxu1 %v4817_v43  ;;  %2559 = vmatmul.mubr.bf16.vlgmr.msra.gmra.mrb[8].mxu0 %v4836_v40  ;;  %v4176_v43 = vld [vmem:[#allocation7 + $0x46c] ss:$16 sps:$4 sm:$0xff]  }
 0x1f6   : > { %2656 = vmatpush1.bf16.msra.mxu1 %v4165_v47  ;;  %2687 = vmatprep.mubr.bf16.mxu1 %v4834_v36  ;;  %v4270_v36 = vld [vmem:[#allocation8 + $0x30] ss:$8 sps:$4 sm:$0xff]  }
 0x1f7   : > { %2657 = vmatprep.subr.bf16.mxu1 %v4170_v41  ;;  %3150 = vmatpush1.bf16.msra.mxu0 %v4261_v48  ;;  %v4207_v47 = vld [vmem:[#allocation7 + $0x5c8] ss:$16 sps:$4 sm:$0xff]   ;;  %v4212_v41 = vld [vmem:[#allocation7 + $0x5ec] ss:$16 sps:$4 sm:$0xff]  }
 0x1f8   : > { %3151 = vmatprep.subr.bf16.mxu0 %v4266_v46  ;;  %v4210_v48 = vld [vmem:[#allocation7 + $0x5e8] ss:$16 sps:$4 sm:$0xff]   ;;  %v4218_v46 = vld [vmem:[#allocation7 + $0x62c] ss:$16 sps:$4 sm:$0xff]  }
 0x1fa   : > { %2658 = vmatpush1.bf16.msra.mxu1 %v4168_v50  ;;  %v4213_v50 = vld [vmem:[#allocation7 + $0x608] ss:$16 sps:$4 sm:$0xff]  }
 0x1fb   : > { %2659 = vmatprep.subr.bf16.mxu1 %v4173_v51  ;;  %3152 = vmatpush1.bf16.msra.mxu0 %v4264_v52  ;;  %v4216_v51 = vld [vmem:[#allocation7 + $0x628] ss:$16 sps:$4 sm:$0xff]   ;;  %v4221_v52 = vld [vmem:[#allocation7 + $0x64c] ss:$16 sps:$4 sm:$0xff]  }
 0x1fc   : > { %3153 = vmatprep.subr.bf16.mxu0 %v4269_v54  ;;  %v4224_v54 = vld [vmem:[#allocation7 + $0x66c] ss:$16 sps:$4 sm:$0xff]  }
 0x1fe   : > { %2660 = vmatpush1.bf16.msra.mxu1 %v4171_v53  ;;  %v4219_v53 = vld [vmem:[#allocation7 + $0x648] ss:$16 sps:$4 sm:$0xff]  }
 0x1ff   : > { %2661 = vmatprep.subr.bf16.mxu1 %v4176_v43  ;;  %3154 = vmatpush1.bf16.msra.mxu0 %v4267_v55  ;;  %v4222_v43 = vld [vmem:[#allocation7 + $0x668] ss:$16 sps:$4 sm:$0xff]   ;;  %v4227_v55 = vld [vmem:[#allocation7 + $0x68c] ss:$16 sps:$4 sm:$0xff]  }
 0x200   : > { %3155 = vmatprep.subr.bf16.mxu0 %v4272_v57  ;;  %v4230_v57 = vld [vmem:[#allocation7 + $0x6ac] ss:$16 sps:$4 sm:$0xff]  }
 0x202   : > { %2662 = vmatpush1.bf16.msra.mxu1 %v4174_v56  ;;  %v4225_v56 = vld [vmem:[#allocation7 + $0x688] ss:$16 sps:$4 sm:$0xff]  }
 0x203   : > { %2663 = vmatprep.subr.bf16.mxu1 %v4179_v58  ;;  %3156 = vmatpush1.bf16.msra.mxu0 %v4270_v36  ;;  %v4233_v58 = vld [vmem:[#allocation7 + $0x6cc] ss:$16 sps:$4 sm:$0xff]  }
 0x204   : > { %3157 = vmatprep.subr.bf16.mxu0 %v4275_v60  ;;  %v4231_v60 = vld [vmem:[#allocation7 + $0x6c8] ss:$16 sps:$4 sm:$0xff]  }
 0x206   : > { %2664 = vmatpush1.bf16.msra.mxu1 %v4177_v59 }
 0x207   : > { %2665 = vmatprep.subr.bf16.mxu1 %v4182_v61  ;;  %3158 = vmatpush1.bf16.msra.mxu0 %v4273_v62  ;;  %v4305_v61 = vld [vmem:[#allocation8 + $0xe4] ss:$8 sps:$4 sm:$0xff]  }
 0x208   : > { %3159 = vmatprep.subr.bf16.mxu0 %v4278_v0  ;;  %v4303_v0 = vld [vmem:[#allocation8 + $0xe0] ss:$8 sps:$4 sm:$0xff]  }
 0x20a   : > { %2666 = vmatpush1.bf16.msra.mxu1 %v4180_v63  ;;  %v4236_v63 = vld [vmem:[#allocation7 + $0x6ec] ss:$16 sps:$4 sm:$0xff]  }
 0x20b   : > { %2667 = vmatprep.subr.bf16.mxu1 %v4185_v2  ;;  %3160 = vmatpush1.bf16.msra.mxu0 %v4276_v3  ;;  %v4234_v2 = vld [vmem:[#allocation7 + $0x6e8] ss:$16 sps:$4 sm:$0xff]   ;;  %v4308_v3 = vld [vmem:[#allocation8 + $0xf4] ss:$8 sps:$4 sm:$0xff]  }
 0x20c   : > { %3161 = vmatprep.subr.bf16.mxu0 %v4281_v5  ;;  %v4306_v5 = vld [vmem:[#allocation8 + $0xf0] ss:$8 sps:$4 sm:$0xff]  }
 0x20e   : > { %2668 = vmatpush1.bf16.msra.mxu1 %v4183_v4  ;;  %v4239_v4 = vld [vmem:[#allocation7 + $0x70c] ss:$16 sps:$4 sm:$0xff]  }
 0x20f   : > { %2669 = vmatprep.subr.bf16.mxu1 %v4188_v6  ;;  %3162 = vmatpush1.bf16.msra.mxu0 %v4279_v1  ;;  %v4237_v6 = vld [vmem:[#allocation7 + $0x708] ss:$16 sps:$4 sm:$0xff]   ;;  %v4242_v1 = vld [vmem:[#allocation7 + $0x72c] ss:$16 sps:$4 sm:$0xff]  }
 0x210   : > { %3163 = vmatprep.subr.bf16.mxu0 %v4284_v14  ;;  %v4240_v14 = vld [vmem:[#allocation7 + $0x728] ss:$16 sps:$4 sm:$0xff]  }
 0x212   : > { %2670 = vmatpush1.bf16.msra.mxu1 %v4186_v7  ;;  %v4311_v7 = vld [vmem:[#allocation8 + $0x104] ss:$8 sps:$4 sm:$0xff]  }
 0x213   : > { %2671 = vmatprep.subr.bf16.mxu1 %v4191_v15  ;;  %3164 = vmatpush1.bf16.msra.mxu0 %v4282_v16  ;;  %v4245_v15 = vld [vmem:[#allocation7 + $0x74c] ss:$16 sps:$4 sm:$0xff]   ;;  %v4243_v16 = vld [vmem:[#allocation7 + $0x748] ss:$16 sps:$4 sm:$0xff]  }
 0x214   : > { %3165 = vmatprep.subr.bf16.mxu0 %v4287_v18  ;;  %v4246_v18 = vld [vmem:[#allocation7 + $0x768] ss:$16 sps:$4 sm:$0xff]  }
 0x216   : > { %2672 = vmatpush1.bf16.msra.mxu1 %v4189_v17  ;;  %v4248_v17 = vld [vmem:[#allocation7 + $0x76c] ss:$16 sps:$4 sm:$0xff]  }
 0x217   : > { %2673 = vmatprep.subr.bf16.mxu1 %v4194_v19  ;;  %3166 = vmatpush1.bf16.msra.mxu0 %v4285_v20  ;;  %v4251_v19 = vld [vmem:[#allocation7 + $0x78c] ss:$16 sps:$4 sm:$0xff]   ;;  %v4249_v20 = vld [vmem:[#allocation7 + $0x788] ss:$16 sps:$4 sm:$0xff]  }
 0x218   : > { %3167 = vmatprep.subr.bf16.mxu0 %v4290_v21  ;;  %v4252_v21 = vld [vmem:[#allocation7 + $0x7a8] ss:$16 sps:$4 sm:$0xff]  }
 0x21a   : > { %2674 = vmatpush1.bf16.msra.mxu1 %v4192_v10  ;;  %v4254_v10 = vld [vmem:[#allocation7 + $0x7ac] ss:$16 sps:$4 sm:$0xff]  }
 0x21b   : > { %2675 = vmatprep.subr.bf16.mxu1 %v4197_v22  ;;  %3168 = vmatpush1.bf16.msra.mxu0 %v4288_v23  ;;  %v4257_v22 = vld [vmem:[#allocation7 + $0x7cc] ss:$16 sps:$4 sm:$0xff]   ;;  %v4255_v23 = vld [vmem:[#allocation7 + $0x7c8] ss:$16 sps:$4 sm:$0xff]  }
 0x21c   : > { %3169 = vmatprep.subr.bf16.mxu0 %v4293_v25  ;;  %v4258_v25 = vld [vmem:[#allocation7 + $0x7e8] ss:$16 sps:$4 sm:$0xff]  }
 0x21e   : > { %2676 = vmatpush1.bf16.msra.mxu1 %v4195_v24  ;;  %v4260_v24 = vld [vmem:[#allocation7 + $0x7ec] ss:$16 sps:$4 sm:$0xff]  }
 0x21f   : > { %2677 = vmatprep.subr.bf16.mxu1 %v4200_v26  ;;  %3170 = vmatpush1.bf16.msra.mxu0 %v4291_v27  ;;  %v4854_v26 = vld [vmem:[%s4898_s4] sm:$0xf] }
 0x220   : > { %3171 = vmatprep.subr.bf16.mxu0 %v4296_v29  ;;  %v1100_v27 = vrot.slane %v4854_v26, %v4793_v9 }
 0x222   : > { %2678 = vmatpush1.bf16.msra.mxu1 %v4198_v28  ;;  %v1104_v28 = vrot.slane %v4854_v26, %v4802_v12 }
 0x223   : > { %2679 = vmatprep.subr.bf16.mxu1 %v4203_v30  ;;  %3172 = vmatpush1.bf16.msra.mxu0 %v4294_v31 }
 0x224   : > { %3173 = vmatprep.subr.bf16.mxu0 %v4299_v34 }
 0x226   : > { %2680 = vmatpush1.bf16.msra.mxu1 %v4201_v32 }
 0x227   : > { %2681 = vmatprep.subr.bf16.mxu1 %v4206_v35  ;;  %3174 = vmatpush1.bf16.msra.mxu0 %v4297_v37 }
 0x228   : > { %3175 = vmatprep.subr.bf16.mxu0 %v4302_v39 }
 0x22a   : > { %2682 = vmatpush1.bf16.msra.mxu1 %v4204_v38 }
 0x22b   : > { %2683 = vmatprep.subr.bf16.mxu1 %v4209_v42  ;;  %3176 = vmatpush1.bf16.msra.mxu0 %v4300_v45 }
 0x22c   : > { %3177 = vmatprep.subr.bf16.mxu0 %v4305_v61  ;;  %v4330_v61 = vld [vmem:[#allocation8 + $0x170] ss:$8 sps:$4 sm:$0xff]  }
 0x22e   : > { %2684 = vmatpush1.bf16.msra.mxu1 %v4207_v47 }
 0x22f   : > { %2685 = vmatprep.subr.bf16.mxu1 %v4212_v41  ;;  %3178 = vmatpush1.bf16.msra.mxu0 %v4303_v0  ;;  %v4338_v0 = vld [vmem:[#allocation8 + $0x194] ss:$8 sps:$4 sm:$0xff]  }
 0x230   : > { %3179 = vmatprep.subr.bf16.mxu0 %v4308_v3  ;;  %v4341_v3 = vld [vmem:[#allocation8 + $0x1a4] ss:$8 sps:$4 sm:$0xff]  }
 0x232   : > { %2686 = vmatpush1.bf16.msra.mxu1 %v4210_v48 }
 0x233   : > { %2698 = vmatprep.subr.bf16.mxu1 %v4215_v49  ;;  %3180 = vmatpush1.bf16.msra.mxu0 %v4306_v5  ;;  %v4344_v5 = vld [vmem:[#allocation8 + $0x1b4] ss:$8 sps:$4 sm:$0xff]  }
 0x234   : > { %3192 = vmatprep.subr.bf16.mxu0 %v4311_v7  ;;  %v4345_v7 = vld [vmem:[#allocation8 + $0x1c0] ss:$8 sps:$4 sm:$0xff]  }
 0x235   : > { %2688 = vmatmul.mubr.bf16.vlgmr.msra.gmra.mrb[12].mxu1 %v4832_v33  ;;  %v4228_v33 = vld [vmem:[#allocation7 + $0x6a8] ss:$16 sps:$4 sm:$0xff]  }
 0x236   : > { %2699 = vmatpush1.bf16.msra.mxu1 %v4213_v50  ;;  %2730 = vmatprep.mubr.bf16.mxu1 %v4839_v44 }
 0x237   : > { %2700 = vmatprep.subr.bf16.mxu1 %v4218_v46 }
 0x23a   : > { %2701 = vmatpush1.bf16.msra.mxu1 %v4216_v51  ;;  %v4309_v51 = vld [vmem:[#allocation8 + $0x100] ss:$8 sps:$4 sm:$0xff]  }
 0x23b   : > { %2702 = vmatprep.subr.bf16.mxu1 %v4221_v52  ;;  %v4314_v52 = vld [vmem:[#allocation8 + $0x114] ss:$8 sps:$4 sm:$0xff]  }
 0x23e   : > { %2703 = vmatpush1.bf16.msra.mxu1 %v4219_v53  ;;  %v4312_v53 = vld [vmem:[#allocation8 + $0x110] ss:$8 sps:$4 sm:$0xff]  }
 0x23f   : > { %2704 = vmatprep.subr.bf16.mxu1 %v4224_v54  ;;  %v4317_v54 = vld [vmem:[#allocation8 + $0x124] ss:$8 sps:$4 sm:$0xff]  }
 0x242   : > { %2705 = vmatpush1.bf16.msra.mxu1 %v4222_v43  ;;  %v4315_v43 = vld [vmem:[#allocation8 + $0x120] ss:$8 sps:$4 sm:$0xff]  }
 0x243   : > { %2706 = vmatprep.subr.bf16.mxu1 %v4227_v55  ;;  %v4320_v55 = vld [vmem:[#allocation8 + $0x134] ss:$8 sps:$4 sm:$0xff]  }
 0x246   : > { %2707 = vmatpush1.bf16.msra.mxu1 %v4225_v56  ;;  %v4318_v56 = vld [vmem:[#allocation8 + $0x130] ss:$8 sps:$4 sm:$0xff]  }
 0x247   : > { %2708 = vmatprep.subr.bf16.mxu1 %v4230_v57  ;;  %v4323_v57 = vld [vmem:[#allocation8 + $0x144] ss:$8 sps:$4 sm:$0xff]  }
 0x248   : > { %v2431_v44 = vpop.f32.mrb[8].mxu1 }
 0x249   : > { %v2433_v36 = vpop.f32.mrb[9].mxu1  ;;  %v2432_v29 = vadd.f32 %v2431_v44, %v1100_v27  ;;  %v4324_v44 = vld [vmem:[#allocation8 + $0x150] ss:$8 sps:$4 sm:$0xff]  }
 0x24a   : > { %2709 = vmatpush1.bf16.msra.mxu1 %v4228_v33  ;;  %v2435_v59 = vpop.f32.mrb[10].mxu1  ;;  %v2434_v30 = vadd.f32 %v2433_v36, %v1104_v28  ;;  %v4321_v33 = vld [vmem:[#allocation8 + $0x140] ss:$8 sps:$4 sm:$0xff]   ;;  %v4329_v36 = vld [vmem:[#allocation8 + $0x164] ss:$8 sps:$4 sm:$0xff]  }
 0x24b   : > { %v2437_v62 = vpop.f32.mrb[11].mxu1  ;;  %2710 = vmatprep.subr.bf16.mxu1 %v4233_v58  ;;  %v2436_v32 = vadd.f32 %v2435_v59, %v1100_v27  ;;  %v4326_v58 = vld [vmem:[#allocation8 + $0x154] ss:$8 sps:$4 sm:$0xff]   ;;  %v4327_v59 = vld [vmem:[#allocation8 + $0x160] ss:$8 sps:$4 sm:$0xff]  }
 0x24c   : > { %v2438_v37 = vadd.f32 %v2437_v62, %v1104_v28  ;;  %v4335_v62 = vld [vmem:[#allocation8 + $0x184] ss:$8 sps:$4 sm:$0xff]  }
 0x24e   : > { %2711 = vmatpush1.bf16.msra.mxu1 %v4231_v60  ;;  %v4332_v60 = vld [vmem:[#allocation8 + $0x174] ss:$8 sps:$4 sm:$0xff]  }
 0x24f   : > { %2712 = vmatprep.subr.bf16.mxu1 %v4236_v63  ;;  %v4333_v63 = vld [vmem:[#allocation8 + $0x180] ss:$8 sps:$4 sm:$0xff]  }
 0x252   : > { %2713 = vmatpush1.bf16.msra.mxu1 %v4234_v2  ;;  %v4336_v2 = vld [vmem:[#allocation8 + $0x190] ss:$8 sps:$4 sm:$0xff]  }
 0x253   : > { %2714 = vmatprep.subr.bf16.mxu1 %v4239_v4  ;;  %v4339_v4 = vld [vmem:[#allocation8 + $0x1a0] ss:$8 sps:$4 sm:$0xff]  }
 0x256   : > { %2715 = vmatpush1.bf16.msra.mxu1 %v4237_v6  ;;  %v4342_v6 = vld [vmem:[#allocation8 + $0x1b0] ss:$8 sps:$4 sm:$0xff]  }
 0x257   : > { %2716 = vmatprep.subr.bf16.mxu1 %v4242_v1  ;;  %v4347_v1 = vld [vmem:[#allocation8 + $0x1c4] ss:$8 sps:$4 sm:$0xff]  }
 0x25a   : > { %2717 = vmatpush1.bf16.msra.mxu1 %v4240_v14  ;;  %v4350_v14 = vld [vmem:[#allocation8 + $0x1d4] ss:$8 sps:$4 sm:$0xff]  }
 0x25b   : > { %2718 = vmatprep.subr.bf16.mxu1 %v4245_v15  ;;  %v4348_v15 = vld [vmem:[#allocation8 + $0x1d0] ss:$8 sps:$4 sm:$0xff]  }
 0x25e   : > { %2719 = vmatpush1.bf16.msra.mxu1 %v4243_v16  ;;  %v4353_v16 = vld [vmem:[#allocation8 + $0x1e4] ss:$8 sps:$4 sm:$0xff]  }
 0x25f   : > { %2720 = vmatprep.subr.bf16.mxu1 %v4248_v17  ;;  %v4351_v17 = vld [vmem:[#allocation8 + $0x1e0] ss:$8 sps:$4 sm:$0xff]  }
 0x262   : > { %2721 = vmatpush1.bf16.msra.mxu1 %v4246_v18  ;;  %v4356_v18 = vld [vmem:[#allocation8 + $0x1f4] ss:$8 sps:$4 sm:$0xff]  }
 0x263   : > { %2722 = vmatprep.subr.bf16.mxu1 %v4251_v19  ;;  %v4354_v19 = vld [vmem:[#allocation8 + $0x1f0] ss:$8 sps:$4 sm:$0xff]  }
 0x266   : > { %2723 = vmatpush1.bf16.msra.mxu1 %v4249_v20  ;;  %v1108_v20 = vrot.slane %v4854_v26, %v449_v11  ;;  %v2822_v11 = vrot.slane %v2817_v8, %v4793_v9 }
 0x267   : > { %2724 = vmatprep.subr.bf16.mxu1 %v4254_v10  ;;  %v1112_v10 = vrot.slane %v4854_v26, %v453_v13  ;;  %v2826_v13 = vrot.slane %v2817_v8, %v4802_v12  ;;  %v3239_v26 = vld [vmem:[%s4901_s7] sm:$0x3] }
 0x26a   : > { %2725 = vmatpush1.bf16.msra.mxu1 %v4252_v21 }
 0x26b   : > { %2726 = vmatprep.subr.bf16.mxu1 %v4257_v22 }
 0x26e   : > { %2727 = vmatpush1.bf16.msra.mxu1 %v4255_v23 }
 0x26f   : > { %2728 = vmatprep.subr.bf16.mxu1 %v4260_v24 }
 0x272   : > { %2729 = vmatpush1.bf16.msra.mxu1 %v4258_v25 }
 0x275   : > { %2731 = vmatmul.mubr.bf16.vlgmr.msra.gmra.mrb[12].mxu1 %v4836_v40 }
 0x2c8   : > { %v2560_v31 = vpop.f32.mrb[8].mxu0 }
 0x2c9   : > { %v3761_v34 = vadd.f32 %v2560_v31, %v2432_v29  ;;  %v2562_v35 = vpop.f32.mrb[9].mxu0 }
 0x2ca   : > { %v3763_v38 = vadd.f32 %v2562_v35, %v2434_v30  ;;  %v2564_v40 = vpop.f32.mrb[10].mxu0 }
 0x2cb   : > { %v3765_v39 = vadd.f32 %v2564_v40, %v2436_v32  ;;  %v2566_v42 = vpop.f32.mrb[11].mxu0  ;;  %v2741_v47 = vmax.f32 %v3761_v34, 0.0 }
 0x2cc   : > { %v3767_v45 = vadd.f32 %v2566_v42, %v2438_v37  ;;  %v2742_v48 = vmax.f32 %v3763_v38, 0.0  ;;  %v3244_v42 = vrot.slane %v3239_v26, %v4793_v9  ;;  %v3754_v9 = vld [vmem:[#allocation2] ss:$0 sm:$0xff] }
 0x2cd   : > { %v2745_v41 = vmax.f32 %v3765_v39, 0.0 }
 0x2ce   : > { %v2746_v49 = vmax.f32 %v3767_v45, 0.0 }
 0x2cf   : > { %v2749_v50 = vpack.c.bf16 %v2745_v41, %v2741_v47  ;;  %v3248_v41 = vrot.slane %v3239_v26, %v4802_v12 }
 0x2d0   : > { %v2750_v46 = vpack.c.bf16 %v2746_v49, %v2742_v48 }
 0x2d2   : > { %3181 = vmatprep.mubr.bf16.mxu0 %v2750_v46 }
 0x2d3   : > { %3182 = vmatmul.mubr.bf16.vlgmr.msra.gmra.mrb[12].mxu0 %v2749_v50 }
 0x2d4   : > { %3193 = vmatpush1.bf16.msra.mxu0 %v4309_v51 }
 0x2d5   : > { %3194 = vmatprep.subr.bf16.mxu0 %v4314_v52 }
 0x2d8   : > { %3195 = vmatpush1.bf16.msra.mxu0 %v4312_v53 }
 0x2d9   : > { %3196 = vmatprep.subr.bf16.mxu0 %v4317_v54 }
 0x2dc   : > { %3197 = vmatpush1.bf16.msra.mxu0 %v4315_v43 }
 0x2dd   : > { %3198 = vmatprep.subr.bf16.mxu0 %v4320_v55 }
 0x2e0   : > { %3199 = vmatpush1.bf16.msra.mxu0 %v4318_v56 }
 0x2e1   : > { %3200 = vmatprep.subr.bf16.mxu0 %v4323_v57 }
 0x2e4   : > { %3201 = vmatpush1.bf16.msra.mxu0 %v4321_v33 }
 0x2e5   : > { %3202 = vmatprep.subr.bf16.mxu0 %v4326_v58 }
 0x2e8   : > { %3203 = vmatpush1.bf16.msra.mxu0 %v4324_v44 }
 0x2e9   : > { %3204 = vmatprep.subr.bf16.mxu0 %v4329_v36 }
 0x2ec   : > { %3205 = vmatpush1.bf16.msra.mxu0 %v4327_v59 }
 0x2ed   : > { %3206 = vmatprep.subr.bf16.mxu0 %v4332_v60 }
 0x2f0   : > { %3207 = vmatpush1.bf16.msra.mxu0 %v4330_v61 }
 0x2f1   : > { %3208 = vmatprep.subr.bf16.mxu0 %v4335_v62 }
 0x2f4   : > { %3209 = vmatpush1.bf16.msra.mxu0 %v4333_v63 }
 0x2f5   : > { %3210 = vmatprep.subr.bf16.mxu0 %v4338_v0 }
 0x2f8   : > { %3211 = vmatpush1.bf16.msra.mxu0 %v4336_v2 }
 0x2f9   : > { %3212 = vmatprep.subr.bf16.mxu0 %v4341_v3 }
 0x2fc   : > { %3213 = vmatpush1.bf16.msra.mxu0 %v4339_v4 }
 0x2fd   : > { %3214 = vmatprep.subr.bf16.mxu0 %v4344_v5 }
 0x300   : > { %3215 = vmatpush1.bf16.msra.mxu0 %v4342_v6 }
 0x301   : > { %3216 = vmatprep.subr.bf16.mxu0 %v4347_v1 }
 0x304   : > { %3217 = vmatpush1.bf16.msra.mxu0 %v4345_v7 }
 0x305   : > { %3218 = vmatprep.subr.bf16.mxu0 %v4350_v14 }
 0x308   : > { %3219 = vmatpush1.bf16.msra.mxu0 %v4348_v15 }
 0x309   : > { %3220 = vmatprep.subr.bf16.mxu0 %v4353_v16 }
 0x30c   : > { %3221 = vmatpush1.bf16.msra.mxu0 %v4351_v17 }
 0x30d   : > { %3222 = vmatprep.subr.bf16.mxu0 %v4356_v18 }
 0x310   : > { %3223 = vmatpush1.bf16.msra.mxu0 %v4354_v19 }
 0x348   : > { %v2732_v21 = vpop.f32.mrb[12].mxu1 }
 0x349   : > { %v3768_v22 = vadd.f32 %v2732_v21, %v1108_v20  ;;  %v2734_v23 = vpop.f32.mrb[13].mxu1 }
 0x34a   : > { %v3769_v24 = vadd.f32 %v2734_v23, %v1112_v10  ;;  %v2736_v25 = vpop.f32.mrb[14].mxu1 }
 0x34b   : > { %v3770_v27 = vadd.f32 %v2736_v25, %v1108_v20  ;;  %v2738_v28 = vpop.f32.mrb[15].mxu1  ;;  %v2743_v30 = vmax.f32 %v3768_v22, 0.0 }
 0x34c   : > { %v3771_v29 = vadd.f32 %v2738_v28, %v1112_v10  ;;  %v2744_v32 = vmax.f32 %v3769_v24, 0.0 }
 0x34d   : > { %v2747_v31 = vmax.f32 %v3770_v27, 0.0 }
 0x34e   : > { %v2748_v34 = vmax.f32 %v3771_v29, 0.0 }
 0x34f   : > { %v2751_v35 = vpack.c.bf16 %v2747_v31, %v2743_v30 }
 0x350   : > { %v2752_v37 = vpack.c.bf16 %v2748_v34, %v2744_v32 }
 0x352   : > { %3224 = vmatprep.mubr.bf16.mxu0 %v2752_v37 }
 0x353   : > { %3225 = vmatmul.mubr.bf16.vlgmr.msra.gmra.mrb[12].mxu0 %v2751_v35 }
 0x426   : > { %v3226_v38 = vpop.f32.mrb[12].mxu0 }
 0x427   : > { %v3772_v40 = vadd.f32 %v3226_v38, %v2822_v11  ;;  %v3228_v39 = vpop.f32.mrb[13].mxu0 }
 0x428   : > { %v3773_v45 = vadd.f32 %v3228_v39, %v2826_v13  ;;  %v3230_v47 = vpop.f32.mrb[14].mxu0 }
 0x429   : > { %v3235_v48 = vmax.f32 %v3772_v40, 0.0  ;;  %v3774_v49 = vadd.f32 %v3230_v47, %v2822_v11  ;;  %v3232_v50 = vpop.f32.mrb[15].mxu0 }
 0x42a   : > { %v3236_v46 = vmax.f32 %v3773_v45, 0.0  ;;  %v3775_v51 = vadd.f32 %v3232_v50, %v2826_v13 }
 0x42b   : > { %v3237_v52 = vmax.f32 %v3774_v49, 0.0  ;;  %v3251_v53 = vmul.f32 %v3244_v42, %v3235_v48 }
 0x42c   : > { %v3238_v54 = vmax.f32 %v3775_v51, 0.0  ;;  %v3252_v43 = vmul.f32 %v3248_v41, %v3236_v46 }
 0x42d   : > { %v3253_v55 = vmul.f32 %v3244_v42, %v3237_v52 }
 0x42e   : > { %v3254_v56 = vmul.f32 %v3248_v41, %v3238_v54  ;;  %v3255_v57 = vadd.f32 %v3252_v43, %v3251_v53 }
 0x430   : > { %3256 = vadd.xlane.f32.xlu0 %v3255_v57  ;;  %v3258_v33 = vadd.f32 %v3254_v56, %v3253_v55 }
 0x434   : > { %3259 = vadd.xlane.f32.xlu0 %v3258_v33 }
 0x4bd   : > { %v3257_v58 = vpop.xlane.xlu0 %3256 }
 0x4be   : > { %v3268_v44 = vadd.f32 %v3754_v9, %v3257_v58 }
 0x4c0   : > { %v3755_v12 = vmul.f32 -1.442695, %v3268_v44 }
 0x4c1   : > { %v3260_v36 = vpop.xlane.xlu0 %3259 }
 0x4c2   : > { %4357 = vpow2.f32 %v3755_v12  ;;  %v3269_v59 = vadd.f32 %v3754_v9, %v3260_v36 }
 0x4c4   : > { %v3756_v60 = vmul.f32 -1.442695, %v3269_v59 }
 0x4c6   : > { %4359 = vpow2.f32 %v3756_v60 }
 0x4cc   : > { %v4358_v61 = vpop.eup %4357 }
 0x4cd   : > { %v3276_v62 = vadd.f32 1.0, %v4358_v61 }
 0x4cf   : > { %4361 = vrcp.f32 %v3276_v62 }
 0x4d0   : > { %v4360_v63 = vpop.eup %4359 }
 0x4d1   : > { %v3277_v0 = vadd.f32 1.0, %v4360_v63 }
 0x4d3   : > { %4363 = vrcp.f32 %v3277_v0 }
 0x4d9   : > { %v4362_v2 = vpop.eup %4361 }
 0x4da   : > { %3283 = vst.msk [vmem:[%s399_s23] sm:$0xff] %vm3282_vm1, %v4362_v2 }
 0x4dd   : > { %v4364_v3 = vpop.eup %4363 }
 0x4de   : > { %3284 = vst.msk [vmem:[%s399_s23 + $0x8] sm:$0xff] %vm3282_vm1, %v4364_v3 }
 0x4df PF: > { %p23_p6 = scmp.ge.s32.totalorder %s4704_s21, 4   ;;  %s4919_s11 = smov %s4513_s12 }
 0x4e0   : > { %s4920_s12 = smov %s4517_s13  ;;  %s4921_s13 = smov %s4714_s26 }
 0x4e1   : > { %s4922_s14 = smov %s4704_s21  ;;  %25 = sbr.rel (!%p23_p6) target bundleno = 8 (0x8), region = 108 }
 0x4e8   :  { %3307 = vsyncpa [#allocation4], 1 }
 0x4e9   :  { %3309 = vsyncpa [#allocation4 + $0x1], 1 }
 0x4ea   :  { %3310 = vsyncpa [#allocation6], 1 }
 0x4eb   :  { %3311 = vsyncpa [#allocation9], 1 }

</bundles_post_ra>
